<compile_context>
chip_gen: v7x
topology: tpu7x:2x2x1
jax: 0.10.0
libtpu: 0.0.40
codegen_flags: <defaults>
</compile_context>

<pallas_src>
import jax
import jax.numpy as jnp
from jax.experimental import pallas as pl
from jax.experimental.pallas import tpu as pltpu

N = 2            # batch
H = W = 32       # spatial (fixed by the fc layer: 16*32*32 inputs)
HW = H * W       # 1024  -> lane-dense
C_OUT = 16       # conv output channels
K = 3            # conv kernel size
TAPS = K * K     # 9
FC_IN = C_OUT * HW   # 16384
FC_OUT = 2
LANE = 128       # lane-dense output slab width


def fused_kernel(pat_ref, cw_ref, cb_ref, fcw_ref, fcb_ref, o_ref):
    """Single invocation; everything resident in VMEM.

    pat_ref : (TAPS, N*HW)        im2col patches, batch packed into lanes
    cw_ref  : (C_OUT, TAPS)       conv weights
    cb_ref  : (C_OUT, 1)          conv bias
    fcw_ref : (FC_OUT, C_OUT, HW) fc weights (transposed, lane-dense)
    fcb_ref : (FC_OUT, 1)         fc bias
    o_ref   : (FC_OUT, LANE)      lane-dense logit slab; column b = batch b
    """
    # --- 3x3 conv as ONE MXU matmul: (16,9) @ (9, N*1024) -> (16, N*1024) ---
    acc = jnp.dot(cw_ref[...], pat_ref[...],
                  preferred_element_type=jnp.float32,
                  precision=jax.lax.Precision.HIGHEST)     # keep f32 semantics
    acc = jnp.maximum(acc + cb_ref[...], 0.0)              # bias + ReLU (VPU)

    # --- fused FC: VPU multiply + lane/sublane reductions (MXU here would be
    #     degenerate: M=1..2, N=2, K=16k) ---
    fcw = fcw_ref[...]                                     # (FC_OUT, C_OUT, HW)
    lane_idx = jax.lax.broadcasted_iota(jnp.int32, (FC_OUT, LANE), 1)
    out = jnp.broadcast_to(fcb_ref[...], (FC_OUT, LANE))   # bias; pad cols sliced off
    for b in range(N):                                     # static unroll, N=2
        acc_b = acc[:, b * HW:(b + 1) * HW]                # aligned (16,1024) lane slice
        lane_sum = jnp.sum(fcw * acc_b[None], axis=-1)     # (FC_OUT, C_OUT)
        logit = jnp.sum(lane_sum, axis=-1, keepdims=True)  # (FC_OUT, 1)
        out = out + jnp.where(lane_idx == b, logit, 0.0)
    o_ref[...] = out                                       # unmasked lane-dense store


@jax.jit
def simple_nn_forward(x, conv_w, conv_b, fc_w, fc_b):
    """x: (N, 1, H, W) float32, NCHW (matches PyTorch)."""
    # im2col layout glue (zero-padded 3x3 taps, flattened HxW, batch in lanes).
    # Under jit this is one tiny (~72 KiB) XLA fusion feeding the kernel.
    x_pad = jnp.pad(x[:, 0], ((0, 0), (1, 1), (1, 1)))            # (N, H+2, W+2)
    patches = jnp.stack(
        [x_pad[:, kh:kh + H, kw:kw + W].reshape(N * HW)           # b*HW + h*W + w
         for kh in range(K) for kw in range(K)], axis=0)          # (TAPS, N*HW)

    conv_w2 = conv_w[:, 0].reshape(C_OUT, TAPS)     # tap order kh*K+kw matches patches
    conv_b2 = conv_b.reshape(C_OUT, 1)
    # fc weight transposed to (FC_OUT, C_OUT, HW): lane-dense, (c, hw) order
    # matches torch.flatten of NCHW (flat index = c*HW + h*W + w).
    fc_w_t = fc_w.T.reshape(FC_OUT, C_OUT, HW)
    fc_b2 = fc_b.reshape(FC_OUT, 1)

    vmem = pl.BlockSpec(memory_space=pltpu.MemorySpace.VMEM)
    out = pl.pallas_call(
        fused_kernel,
        out_shape=jax.ShapeDtypeStruct((FC_OUT, LANE), jnp.float32),
        in_specs=[vmem, vmem, vmem, vmem, vmem],
        out_specs=vmem,
    )(patches, conv_w2, conv_b2, fc_w_t, fc_b2)
    return out[:, :N].T                               # (N, FC_OUT)


def reference_forward(x, conv_w, conv_b, fc_w, fc_b):
    y = jax.lax.conv_general_dilated(
        x, conv_w, window_strides=(1, 1), padding="SAME",
        dimension_numbers=("NCHW", "OIHW", "NCHW"),
        precision=jax.lax.Precision.HIGHEST,
    ) + conv_b[None, :, None, None]
    y = jnp.maximum(y, 0.0)
    y = y.reshape(x.shape[0], FC_IN)
    return jnp.dot(y, fc_w, precision=jax.lax.Precision.HIGHEST) + fc_b[None, :]


if __name__ == "__main__":
    key = jax.random.PRNGKey(0)
    k_x, k_cw, k_cb, k_fw, k_fb = jax.random.split(key, 5)

    # deterministic synthetic parameters (shapes match nn.Module __init__)
    x = jax.random.normal(k_x, (N, 1, H, W), jnp.float32)
    conv_w = jax.random.normal(k_cw, (C_OUT, 1, K, K), jnp.float32) * 0.1
    conv_b = jax.random.normal(k_cb, (C_OUT,), jnp.float32) * 0.1
    fc_w = jax.random.normal(k_fw, (FC_IN, FC_OUT), jnp.float32) * 0.01
    fc_b = jax.random.normal(k_fb, (FC_OUT,), jnp.float32) * 0.01

    out = jax.block_until_ready(simple_nn_forward(x, conv_w, conv_b, fc_w, fc_b))
    ref = reference_forward(x, conv_w, conv_b, fc_w, fc_b)

    assert out.shape == (N, FC_OUT)
    assert jnp.allclose(out, ref, rtol=1e-4, atol=2e-4), (out, ref)

    print("KERNEL_OK")
</pallas_src>

<mosaic_0001>
module attributes {stable_mosaic.version = 11 : i64} {
  func.func @fused_kernel(%arg0: memref<9x2048xf32, #tpu.memory_space<vmem>>, %arg1: memref<16x9xf32, #tpu.memory_space<vmem>>, %arg2: memref<16x1xf32, #tpu.memory_space<vmem>>, %arg3: memref<2x16x1024xf32, #tpu.memory_space<vmem>>, %arg4: memref<2x1xf32, #tpu.memory_space<vmem>>, %arg5: memref<2x128xf32, #tpu.memory_space<vmem>>) attributes {dimension_semantics = [], scalar_prefetch = 0 : i64, scratch_operands = 0 : i64, tpu.core_type = #tpu.core_type<tc>} {
    %c0 = arith.constant 0 : index
    %c0_0 = arith.constant 0 : index
    %0 = vector.load %arg1[%c0, %c0_0] : memref<16x9xf32, #tpu.memory_space<vmem>>, vector<16x9xf32>
    %c0_1 = arith.constant 0 : index
    %c0_2 = arith.constant 0 : index
    %1 = vector.load %arg0[%c0_1, %c0_2] : memref<9x2048xf32, #tpu.memory_space<vmem>>, vector<9x2048xf32>
    %cst = arith.constant dense<0.000000e+00> : vector<16x2048xf32>
    %2 = tpu.matmul %0, %1, %cst {dimension_numbers = #tpu.dot_dimension_numbers<[1], [0], [0], [1], [0, 0, 1, 1], [], []>, precision = #tpu.contract_precision<fp32>} : vector<16x9xf32>, vector<9x2048xf32>, vector<16x2048xf32> -> vector<16x2048xf32>
    %c0_3 = arith.constant 0 : index
    %c0_4 = arith.constant 0 : index
    %3 = vector.load %arg2[%c0_3, %c0_4] : memref<16x1xf32, #tpu.memory_space<vmem>>, vector<16x1xf32>
    %4 = vector.broadcast %3 : vector<16x1xf32> to vector<16x2048xf32>
    %5 = arith.addf %2, %4 : vector<16x2048xf32>
    %cst_5 = arith.constant 0.000000e+00 : f32
    %6 = vector.broadcast %cst_5 : f32 to vector<16x2048xf32>
    %7 = arith.maximumf %5, %6 : vector<16x2048xf32>
    %c0_6 = arith.constant 0 : index
    %c0_7 = arith.constant 0 : index
    %c0_8 = arith.constant 0 : index
    %8 = vector.load %arg3[%c0_6, %c0_7, %c0_8] : memref<2x16x1024xf32, #tpu.memory_space<vmem>>, vector<2x16x1024xf32>
    %9 = tpu.iota {dimensions = array<i32: 1>} : vector<2x128xi32>
    %c0_9 = arith.constant 0 : index
    %c0_10 = arith.constant 0 : index
    %10 = vector.load %arg4[%c0_9, %c0_10] : memref<2x1xf32, #tpu.memory_space<vmem>>, vector<2x1xf32>
    %11 = vector.shape_cast %10 : vector<2x1xf32> to vector<2x1xf32>
    %12 = vector.broadcast %11 : vector<2x1xf32> to vector<2x128xf32>
    %13 = vector.extract_strided_slice %7 {offsets = [0, 0], sizes = [16, 1024], strides = [1, 1]} : vector<16x2048xf32> to vector<16x1024xf32>
    %14 = vector.shape_cast %13 : vector<16x1024xf32> to vector<1x16x1024xf32>
    %15 = vector.broadcast %14 : vector<1x16x1024xf32> to vector<2x16x1024xf32>
    %16 = arith.mulf %8, %15 : vector<2x16x1024xf32>
    %cst_11 = arith.constant dense<0.000000e+00> : vector<2x16xf32>
    %17 = vector.multi_reduction <add>, %16, %cst_11 [2] : vector<2x16x1024xf32> to vector<2x16xf32>
    %cst_12 = arith.constant dense<0.000000e+00> : vector<2xf32>
    %18 = vector.multi_reduction <add>, %17, %cst_12 [1] : vector<2x16xf32> to vector<2xf32>
    %19 = vector.shape_cast %18 : vector<2xf32> to vector<2x1xf32>
    %c0_i32 = arith.constant 0 : i32
    %20 = vector.broadcast %c0_i32 : i32 to vector<2x128xi32>
    %21 = arith.cmpi eq, %9, %20 : vector<2x128xi32>
    %cst_13 = arith.constant 0.000000e+00 : f32
    %22 = vector.shape_cast %19 : vector<2x1xf32> to vector<2x1xf32>
    %23 = vector.broadcast %22 : vector<2x1xf32> to vector<2x128xf32>
    %24 = vector.broadcast %cst_13 : f32 to vector<2x128xf32>
    %25 = arith.select %21, %23, %24 : vector<2x128xi1>, vector<2x128xf32>
    %26 = arith.addf %12, %25 : vector<2x128xf32>
    %27 = vector.extract_strided_slice %7 {offsets = [0, 1024], sizes = [16, 1024], strides = [1, 1]} : vector<16x2048xf32> to vector<16x1024xf32>
    %28 = vector.shape_cast %27 : vector<16x1024xf32> to vector<1x16x1024xf32>
    %29 = vector.broadcast %28 : vector<1x16x1024xf32> to vector<2x16x1024xf32>
    %30 = arith.mulf %8, %29 : vector<2x16x1024xf32>
    %cst_14 = arith.constant dense<0.000000e+00> : vector<2x16xf32>
    %31 = vector.multi_reduction <add>, %30, %cst_14 [2] : vector<2x16x1024xf32> to vector<2x16xf32>
    %cst_15 = arith.constant dense<0.000000e+00> : vector<2xf32>
    %32 = vector.multi_reduction <add>, %31, %cst_15 [1] : vector<2x16xf32> to vector<2xf32>
    %33 = vector.shape_cast %32 : vector<2xf32> to vector<2x1xf32>
    %c1_i32 = arith.constant 1 : i32
    %34 = vector.broadcast %c1_i32 : i32 to vector<2x128xi32>
    %35 = arith.cmpi eq, %9, %34 : vector<2x128xi32>
    %cst_16 = arith.constant 0.000000e+00 : f32
    %36 = vector.shape_cast %33 : vector<2x1xf32> to vector<2x1xf32>
    %37 = vector.broadcast %36 : vector<2x1xf32> to vector<2x128xf32>
    %38 = vector.broadcast %cst_16 : f32 to vector<2x128xf32>
    %39 = arith.select %35, %37, %38 : vector<2x128xi1>, vector<2x128xf32>
    %40 = arith.addf %26, %39 : vector<2x128xf32>
    %c0_17 = arith.constant 0 : index
    %c0_18 = arith.constant 0 : index
    %41 = vector.load %arg5[%c0_17, %c0_18] : memref<2x128xf32, #tpu.memory_space<vmem>>, vector<2x128xf32>
    tpu.vector_store %arg5[%c0_17, %c0_18], %40 {strides = array<i32>} : memref<2x128xf32, #tpu.memory_space<vmem>>, vector<2x128xf32>,
    return
  }
}

</mosaic_0001>

<bundles_post_ra>
// kernel: squeeze.3
= control target key start
LH: loop header
LB: loop body
LE: loop exit
PB: predicated region body
PF: predicated region fallthrough
CT: control target
= control target key end

     0   :  { %vm16_vm0 = vcmask 130048   ;;  %s61_s0 = inlined_call_operand.vmem [shape: f32[16,3,3], index: 0, kind: input, shape index: {}]   ;;  %s62_s1 = inlined_call_operand.vmem [shape: f32[16,9], index: 1, kind: output, shape index: {}]  }
   0x1   :  { %v29_v0 = vld [vmem:[%s61_s0 + $0x8] sm:$0xf]  ;;  %v30_v1 = vld [vmem:[%s61_s0 + $0x4] sm:$0xf]  ;;  %v13_v2 = vld [vmem:[%s61_s0] sm:$0xf] }
   0x2   :  { %8 = vst [vmem:[#allocation0 + $0x10] sm:$0xf] %v29_v0  ;;  %12 = vst [vmem:[#allocation0 + $0x8] sm:$0xf] %v30_v1 }
   0x3   :  { %14 = vst [vmem:[#allocation0] sm:$0xf] %v13_v2 }
   0x9   :  { %v19_v4 = vld [vmem:[#allocation0 + $0x8] sm:$0x7]   ;;  %v24_v5 = vld [vmem:[#allocation0 + $0x10] sm:$0x7]  }
   0xa   :  { %v15_v3 = vld [vmem:[#allocation0] sm:$0x7]   ;;  %31 = vst.msk [vmem:[%s62_s1 + $0x3] sm:$0x7] %vm16_vm0, %v19_v4   ;;  %32 = vst.msk [vmem:[%s62_s1 + $0x6] sm:$0x7] %vm16_vm0, %v24_v5  }
   0xb   :  { %17 = vst.msk [vmem:[%s62_s1] sm:$0x7] %vm16_vm0, %v15_v3  }

// kernel: simple_nn_forward.1
= control target key start
LH: loop header
LB: loop body
LE: loop exit
PB: predicated region body
PF: predicated region fallthrough
CT: control target
= control target key end

     0   :  { %vm73_vm0 = vcmask 1040384   ;;  %v6214_v3 = vmov 0.0   ;;  %vm66_vm1 = vcmask 72704   ;;  %vm4595_vm2 = vcmask 130112   ;;  %s6200_s0 = inlined_call_operand.vmem [shape: f32[9,2048], index: 0, kind: input, shape index: {}]   ;;  %s6201_s1 = inlined_call_operand.vmem [shape: f32[16,9], index: 1, kind: input, shape index: {}]   ;;  %s6202_s2 = inlined_call_operand.vmem [shape: f32[16,1], index: 2, kind: input, shape index: {}]   ;;  %s6203_s3 = inlined_call_operand.vmem [shape: f32[2,16,1024], index: 3, kind: input, shape index: {}]   ;;  %s6204_s4 = inlined_call_operand.vmem [shape: f32[2,1], index: 4, kind: input, shape index: {}]   ;;  %s6205_s5 = inlined_call_operand.vmem [shape: f32[2,128], index: 5, kind: output, shape index: {}]  }
   0x1   :  { %v23_v0 = vld [vmem:[%s6200_s0 + $0x8] sm:$0xff]  ;;  %v25_v2 = vld [vmem:[%s6200_s0 + $0x18] sm:$0xff]  ;;  %190 = vmatprep.mubr.f32.mxu0 %v6214_v3  ;;  %730 = vmatprep.mubr.f32.mxu1 %v6214_v3  ;;  %v22_v8 = vld [vmem:[%s6200_s0] sm:$0xff]  ;;  %vm4606_vm3 = vcmask 1041409   ;;  %vm4609_vm4 = vcmask 123904  }
   0x2   :  { %v39_v1 = vld [vmem:[%s6200_s0 + $0x88] sm:$0x1]  ;;  %v122_v5 = vand.u32 4294901760, %v23_v0  ;;  %v41_v6 = vld [vmem:[%s6200_s0 + $0x98] sm:$0x1]  ;;  %v662_v7 = vand.u32 4294901760, %v25_v2 }
   0x3   :  { %v78_v4 = vsel %vm73_vm0, %v39_v1, 0  ;;  %v84_v10 = vsel %vm73_vm0, %v41_v6, 0  ;;  %v38_v11 = vld [vmem:[%s6200_s0 + $0x80] sm:$0x1]  ;;  %v124_v12 = vand.u32 4294901760, %v22_v8  ;;  %v24_v13 = vld [vmem:[%s6200_s0 + $0x10] sm:$0xff] }
   0x4   :  { %v126_v9 = vand.u32 4294901760, %v78_v4  ;;  %v5164_v14 = vsub.f32 %v23_v0, %v122_v5  ;;  %v666_v15 = vand.u32 4294901760, %v84_v10  ;;  %v5166_v16 = vsub.f32 %v25_v2, %v662_v7  ;;  %v40_v18 = vld [vmem:[%s6200_s0 + $0x90] sm:$0x1]  ;;  %v20_v19 = vld [vmem:[%s6201_s1] sm:$0xff]  ;;  %v21_v32 = vld [vmem:[%s6201_s1 + $0x8] sm:$0xff] }
   0x5   :  { %v75_v17 = vsel %vm73_vm0, %v38_v11, 0  ;;  %v5179_v23 = vsub.f32 %v22_v8, %v124_v12  ;;  %v81_v26 = vsel %vm73_vm0, %v40_v18, 0  ;;  %v664_v27 = vand.u32 4294901760, %v24_v13  ;;  %v5264_v8 = vld [vmem:[%s6200_s0 + $0x28] sm:$0xff] }
   0x6   :  { %v5175_v20 = vpack.c.bf16 %v126_v9, %v122_v5  ;;  %v5177_v21 = vsub.f32 %v78_v4, %v126_v9  ;;  %v128_v22 = vand.u32 4294901760, %v75_v17  ;;  %v5181_v24 = vpack.c.bf16 %v666_v15, %v662_v7  ;;  %v43_v9 = vld [vmem:[%s6200_s0 + $0xa8] sm:$0x1] }
   0x7   :  { %v5183_v25 = vsub.f32 %v84_v10, %v666_v15  ;;  %v668_v30 = vand.u32 4294901760, %v81_v26  ;;  %v68_v31 = vsel %vm66_vm1, %v20_v19, 0  ;;  %v5196_v33 = vsub.f32 %v24_v13, %v664_v27  ;;  %v42_v10 = vld [vmem:[%s6200_s0 + $0xa0] sm:$0x1]  ;;  %v5282_v15 = vld [vmem:[%s6200_s0 + $0x38] sm:$0xff] }
   0x8   :  { %4720 = vmatprep.subr.bf16.mxu0 %v5175_v20  ;;  %v5187_v28 = vpack.c.bf16 %v128_v22, %v124_v12  ;;  %v5189_v29 = vsub.f32 %v75_v17, %v128_v22  ;;  %4744 = vmatprep.subr.bf16.mxu1 %v5181_v24  ;;  %v5198_v34 = vand.u32 4294901760, %v68_v31  ;;  %v215_v35 = vand.u32 4294901760, %v5164_v14  ;;  %v5277_v13 = vld [vmem:[%s6200_s0 + $0x20] sm:$0xff]  ;;  %v45_v19 = vld [vmem:[%s6200_s0 + $0xb8] sm:$0x1] }
   0x9   :  { %v227_v36 = vand.u32 4294901760, %v5177_v21  ;;  %v5203_v37 = vpack.c.bf16 %v668_v30, %v664_v27  ;;  %v5205_v38 = vsub.f32 %v81_v26, %v668_v30  ;;  %v221_v39 = vand.u32 4294901760, %v5179_v23  ;;  %v44_v22 = vld [vmem:[%s6200_s0 + $0xb0] sm:$0x1] }
   0xa   :  { %4722 = vmatpush1.bf16.msra.mxu0 %v5187_v28  ;;  %v233_v40 = vand.u32 4294901760, %v5189_v29  ;;  %v5210_v41 = vsub.f32 %v68_v31, %v5198_v34  ;;  %v216_v42 = vsub.f32 %v5164_v14, %v215_v35  ;;  %v71_v44 = vsel %vm66_vm1, %v21_v32, 0 }
   0xb   :  { %v228_v43 = vsub.f32 %v5177_v21, %v227_v36  ;;  %4746 = vmatpush1.bf16.msra.mxu1 %v5203_v37  ;;  %v222_v45 = vsub.f32 %v5179_v23, %v221_v39  ;;  %v5226_v47 = vand.u32 4294901760, %v71_v44  ;;  %v755_v48 = vand.u32 4294901760, %v5166_v16 }
   0xc   :  { %v234_v46 = vsub.f32 %v5189_v29, %v233_v40  ;;  %v5230_v49 = vand.u32 4294901760, %v5210_v41  ;;  %v217_v50 = vand.u32 4294901760, %v216_v42  ;;  %v767_v52 = vand.u32 4294901760, %v5183_v25 }
   0xd   :  { %v229_v51 = vand.u32 4294901760, %v228_v43  ;;  %v223_v53 = vand.u32 4294901760, %v222_v45  ;;  %v5234_v55 = vsub.f32 %v71_v44, %v5226_v47  ;;  %v756_v56 = vsub.f32 %v5166_v16, %v755_v48  ;;  %v5309_v45 = vld [vmem:[%s6200_s0 + $0x30] sm:$0xff] }
   0xe   :  { %v235_v54 = vand.u32 4294901760, %v234_v46  ;;  %v194_v57 = vsub.f32 %v5210_v41, %v5230_v49  ;;  %v768_v59 = vsub.f32 %v5183_v25, %v767_v52  ;;  %v761_v60 = vand.u32 4294901760, %v5196_v33 }
   0xf   :  { %v4723_v58 = vpack.c.bf16 %v229_v51, %v217_v50  ;;  %v5246_v62 = vand.u32 4294901760, %v5234_v55  ;;  %v757_v63 = vand.u32 4294901760, %v756_v56  ;;  %v773_v0 = vand.u32 4294901760, %v5205_v38 }
  0x10   :  { %v4725_v61 = vpack.c.bf16 %v235_v54, %v223_v53  ;;  %v5249_v1 = vand.u32 4294901760, %v194_v57  ;;  %v769_v2 = vand.u32 4294901760, %v768_v59  ;;  %v762_v4 = vsub.f32 %v5196_v33, %v761_v60 }
  0x11   :  { %4724 = vmatprep.subr.bf16.mxu0 %v4723_v58  ;;  %v205_v5 = vsub.f32 %v5234_v55, %v5246_v62  ;;  %v774_v6 = vsub.f32 %v5205_v38, %v773_v0  ;;  %v4727_v7 = vpack.c.bf16 %v5177_v21, %v5164_v14  ;;  %v4751_v26 = vpack.c.bf16 %v5183_v25, %v5166_v16  ;;  %v31_v16 = vld [vmem:[%s6200_s0 + $0x48] sm:$0xff]  ;;  %v30_v25 = vld [vmem:[%s6200_s0 + $0x40] sm:$0xff] }
  0x12   :  { %196 = vmatmul.mubr.f32.vlgmr.msra.gmra.mrb[0].mxu0 %v5249_v1  ;;  %736 = vmatmul.mubr.f32.vlgmr.msra.gmra.mrb[0].mxu1 %v5249_v1  ;;  %v4747_v11 = vpack.c.bf16 %v769_v2, %v757_v63  ;;  %v763_v12 = vand.u32 4294901760, %v762_v4  ;;  %v5297_v27 = vsel %vm73_vm0, %v43_v9, 0  ;;  %v1202_v30 = vand.u32 4294901760, %v5264_v8 }
  0x13   :  { %201 = vmatprep.mubr.f32.mxu0 %v6214_v3  ;;  %4726 = vmatpush1.bf16.msra.mxu0 %v4725_v61  ;;  %v5285_v17 = vand.u32 4294901760, %v205_v5  ;;  %v775_v18 = vand.u32 4294901760, %v774_v6  ;;  %v5301_v31 = vsel %vm73_vm0, %v42_v10, 0  ;;  %v1206_v42 = vand.u32 4294901760, %v5297_v27 }
  0x14   :  { %741 = vmatprep.mubr.f32.mxu1 %v6214_v3  ;;  %4748 = vmatprep.subr.bf16.mxu1 %v4747_v11  ;;  %v1204_v43 = vand.u32 4294901760, %v5277_v13  ;;  %v1208_v44 = vand.u32 4294901760, %v5301_v31  ;;  %v5316_v46 = vsub.f32 %v5264_v8, %v1202_v30  ;;  %v5319_v50 = vsel %vm73_vm0, %v45_v19, 0 }
  0x15   :  { %v4749_v32 = vpack.c.bf16 %v775_v18, %v763_v12  ;;  %4728 = vmatprep.subr.bf16.mxu0 %v4727_v7  ;;  %v1742_v51 = vand.u32 4294901760, %v5282_v15  ;;  %v5323_v53 = vsel %vm73_vm0, %v44_v22, 0  ;;  %v4729_v54 = vpack.c.bf16 %v5189_v29, %v5179_v23 }
  0x16   :  { %207 = vmatmul.mubr.f32.gmra.mrb[2].mxu0 %v5285_v17  ;;  %747 = vmatmul.mubr.f32.gmra.mrb[2].mxu1 %v5285_v17  ;;  %v4753_v56 = vpack.c.bf16 %v5205_v38, %v5196_v33  ;;  %v5333_v57 = vsub.f32 %v5297_v27, %v1206_v42  ;;  %v1746_v58 = vand.u32 4294901760, %v5319_v50  ;;  %v5340_v59 = vsub.f32 %v5277_v13, %v1204_v43  ;;  %v53_v27 = vld [vmem:[%s6200_s0 + $0xf8] sm:$0x1] }
  0x17   :  { %4750 = vmatpush1.bf16.msra.mxu1 %v4749_v32  ;;  %297 = vmatprep.mubr.f32.mxu0 %v6214_v3  ;;  %v5345_v61 = vsub.f32 %v5301_v31, %v1208_v44  ;;  %v5348_v63 = vsub.f32 %v5282_v15, %v1742_v51  ;;  %v1744_v2 = vand.u32 4294901760, %v5309_v45  ;;  %v1748_v5 = vand.u32 4294901760, %v5323_v53  ;;  %v33_v31 = vld [vmem:[%s6200_s0 + $0x58] sm:$0xff] }
  0x18   :  { %837 = vmatprep.mubr.f32.mxu1 %v6214_v3  ;;  %4752 = vmatprep.subr.bf16.mxu1 %v4751_v26  ;;  %v5352_v4 = vsub.f32 %v5319_v50, %v1746_v58  ;;  %v6213_v6 = vand.u32 4294901760, %v5316_v46  ;;  %v6212_v9 = vand.u32 4294901760, %v5333_v57  ;;  %v6209_v10 = vand.u32 4294901760, %v5340_v59 }
  0x19   :  { %v5359_v7 = vsub.f32 %v5309_v45, %v1744_v2  ;;  %v6208_v11 = vand.u32 4294901760, %v5345_v61  ;;  %v4735_v12 = vpack.c.bf16 %v227_v36, %v215_v35  ;;  %v5370_v15 = vsub.f32 %v5323_v53, %v1748_v5 }
  0x1a   :  { %299 = vmatmul.mubr.f32.vlgmr.msra.gmra.mrb[0].mxu0 %v5198_v34  ;;  %839 = vmatmul.mubr.f32.vlgmr.msra.gmra.mrb[0].mxu1 %v5198_v34  ;;  %v1296_v18 = vsub.f32 %v5316_v46, %v6213_v6  ;;  %v6211_v19 = vand.u32 4294901760, %v5348_v63  ;;  %v1308_v22 = vsub.f32 %v5333_v57, %v6212_v9  ;;  %v1302_v14 = vsub.f32 %v5340_v59, %v6209_v10 }
  0x1b   :  { %304 = vmatprep.mubr.f32.mxu0 %v6214_v3  ;;  %4730 = vmatpush1.bf16.msra.mxu0 %v4729_v54  ;;  %v1314_v21 = vsub.f32 %v5345_v61, %v6208_v11  ;;  %v6210_v35 = vand.u32 4294901760, %v5352_v4  ;;  %v5393_v36 = vpack.c.bf16 %v233_v40, %v221_v39  ;;  %v6207_v32 = vand.u32 4294901760, %v5359_v7 }
  0x1c   :  { %844 = vmatprep.mubr.f32.mxu1 %v6214_v3  ;;  %4754 = vmatpush1.bf16.msra.mxu1 %v4753_v56  ;;  %v1836_v26 = vsub.f32 %v5348_v63, %v6211_v19  ;;  %v6206_v45 = vand.u32 4294901760, %v5370_v15  ;;  %v1297_v50 = vand.u32 4294901760, %v1296_v18  ;;  %v1309_v53 = vand.u32 4294901760, %v1308_v22  ;;  %v47_v18 = vld [vmem:[%s6200_s0 + $0xc8] sm:$0x1] }
  0x1d   :  { %4732 = vmatprep.subr.bf16.mxu0 %v5175_v20  ;;  %4756 = vmatprep.subr.bf16.mxu1 %v5181_v24  ;;  %v1303_v54 = vand.u32 4294901760, %v1302_v14  ;;  %v1848_v23 = vsub.f32 %v5352_v4, %v6210_v35  ;;  %v1315_v29 = vand.u32 4294901760, %v1314_v21  ;;  %v1842_v40 = vsub.f32 %v5359_v7, %v6207_v32 }
  0x1e   :  { %306 = vmatmul.mubr.f32.gmra.mrb[2].mxu0 %v5226_v47  ;;  %846 = vmatmul.mubr.f32.gmra.mrb[2].mxu1 %v5226_v47  ;;  %v1837_v39 = vand.u32 4294901760, %v1836_v26  ;;  %v1854_v56 = vsub.f32 %v5370_v15, %v6206_v45  ;;  %v4759_v22 = vpack.c.bf16 %v767_v52, %v755_v48  ;;  %v5424_v14 = vpack.c.bf16 %v773_v0, %v761_v60  ;;  %v46_v60 = vld [vmem:[%s6200_s0 + $0xc0] sm:$0x1]  ;;  %v49_v0 = vld [vmem:[%s6200_s0 + $0xd8] sm:$0x1] }
  0x1f   :  { %384 = vmatprep.mubr.f32.mxu0 %v6214_v3  ;;  %924 = vmatprep.mubr.f32.mxu1 %v6214_v3  ;;  %v5430_v21 = vpack.c.bf16 %v1206_v42, %v1202_v30  ;;  %v1849_v26 = vand.u32 4294901760, %v1848_v23  ;;  %v5442_v33 = vpack.c.bf16 %v1208_v44, %v1204_v43  ;;  %v5444_v38 = vpack.c.bf16 %v1746_v58, %v1742_v51  ;;  %v48_v58 = vld [vmem:[%s6200_s0 + $0xd0] sm:$0x1] }
  0x20   :  { %v1843_v48 = vand.u32 4294901760, %v1842_v40  ;;  %v1855_v52 = vand.u32 4294901760, %v1854_v56  ;;  %v5454_v8 = vpack.c.bf16 %v1748_v5, %v1744_v2  ;;  %v5456_v13 = vpack.c.bf16 %v1309_v53, %v1297_v50 }
  0x21   :  { %v102_v30 = vsel %vm73_vm0, %v47_v18, 0  ;;  %v5466_v42 = vpack.c.bf16 %v1315_v29, %v1303_v54  ;;  %v5468_v43 = vpack.c.bf16 %v1849_v26, %v1837_v39  ;;  %v2282_v51 = vand.u32 4294901760, %v31_v16  ;;  %v32_v54 = vld [vmem:[%s6200_s0 + $0x50] sm:$0xff] }
  0x22   :  { %387 = vmatmul.mubr.f32.vlgmr.msra.gmra.mrb[0].mxu0 %v5210_v41  ;;  %927 = vmatmul.mubr.f32.vlgmr.msra.gmra.mrb[0].mxu1 %v5210_v41  ;;  %v5470_v44 = vpack.c.bf16 %v1855_v52, %v1843_v48  ;;  %v2286_v2 = vand.u32 4294901760, %v102_v30  ;;  %v99_v5 = vsel %vm73_vm0, %v46_v60, 0  ;;  %v2284_v50 = vand.u32 4294901760, %v30_v25 }
  0x23   :  { %392 = vmatprep.mubr.f32.mxu0 %v6214_v3  ;;  %4734 = vmatpush1.bf16.msra.mxu0 %v5187_v28  ;;  %v108_v53 = vsel %vm73_vm0, %v49_v0, 0  ;;  %v5482_v23 = vsub.f32 %v31_v16, %v2282_v51  ;;  %v2288_v29 = vand.u32 4294901760, %v99_v5  ;;  %v2822_v39 = vand.u32 4294901760, %v33_v31 }
  0x24   :  { %932 = vmatprep.mubr.f32.mxu1 %v6214_v3  ;;  %4758 = vmatpush1.bf16.msra.mxu1 %v5203_v37  ;;  %v2826_v40 = vand.u32 4294901760, %v108_v53  ;;  %v5486_v56 = vpack.c.bf16 %v2286_v2, %v2282_v51  ;;  %v5488_v18 = vsub.f32 %v102_v30, %v2286_v2  ;;  %v5490_v26 = vsub.f32 %v30_v25, %v2284_v50 }
  0x25   :  { %4736 = vmatprep.subr.bf16.mxu0 %v4735_v12  ;;  %4760 = vmatprep.subr.bf16.mxu1 %v4759_v22  ;;  %6228 = vst [vmem:[#allocation2_spill] sm:$0xff] %v5482_v23  ;;  %v105_v48 = vsel %vm73_vm0, %v48_v58, 0  ;;  %v5495_v12 = vpack.c.bf16 %v2288_v29, %v2284_v50  ;;  %v5497_v22 = vsub.f32 %v99_v5, %v2288_v29  ;;  %v2824_v52 = vand.u32 4294901760, %v32_v54 }
  0x26   :  { %395 = vmatmul.mubr.f32.gmra.mrb[2].mxu0 %v5234_v55  ;;  %935 = vmatmul.mubr.f32.gmra.mrb[2].mxu1 %v5234_v55  ;;  %6229 = vst [vmem:[#allocation3_spill] sm:$0xff] %v5488_v18  ;;  %6230 = vst [vmem:[#allocation4_spill] sm:$0xff] %v5490_v26  ;;  %v5499_v16 = vpack.c.bf16 %v2826_v40, %v2822_v39  ;;  %v5501_v60 = vsub.f32 %v33_v31, %v2822_v39  ;;  %v2828_v30 = vand.u32 4294901760, %v105_v48 }
  0x27   :  { %469 = vmatprep.mubr.f32.mxu0 %v6214_v3  ;;  %1009 = vmatprep.mubr.f32.mxu1 %v6214_v3  ;;  %6231 = vst [vmem:[#allocation5_spill] sm:$0xff] %v5497_v22  ;;  %v5503_v0 = vsub.f32 %v108_v53, %v2826_v40  ;;  %v2375_v25 = vand.u32 4294901760, %v5482_v23  ;;  %v5506_v51 = vsub.f32 %v32_v54, %v2824_v52  ;;  %v2387_v58 = vand.u32 4294901760, %v5488_v18 }
  0x28   :  { %6232 = vst [vmem:[#allocation6_spill] sm:$0xff] %v5501_v60  ;;  %v2381_v2 = vand.u32 4294901760, %v5490_v26  ;;  %v2393_v50 = vand.u32 4294901760, %v5497_v22  ;;  %v5513_v5 = vpack.c.bf16 %v2828_v30, %v2824_v52  ;;  %v5515_v31 = vsub.f32 %v105_v48, %v2828_v30 }
  0x29   :  { %6233 = vst [vmem:[#allocation7_spill] sm:$0xff] %v5503_v0  ;;  %6234 = vst [vmem:[#allocation8_spill] sm:$0xff] %v5506_v51  ;;  %v2376_v53 = vsub.f32 %v5482_v23, %v2375_v25  ;;  %v2915_v29 = vand.u32 4294901760, %v5501_v60  ;;  %v2388_v54 = vsub.f32 %v5488_v18, %v2387_v58  ;;  %v2927_v45 = vand.u32 4294901760, %v5503_v0 }
  0x2a   :  { %473 = vmatmul.mubr.f32.vlgmr.msra.gmra.mrb[0].mxu0 %v5230_v49  ;;  %1013 = vmatmul.mubr.f32.vlgmr.msra.gmra.mrb[0].mxu1 %v5230_v49  ;;  %6235 = vst [vmem:[#allocation9_spill] sm:$0xff] %v5515_v31  ;;  %v2382_v39 = vsub.f32 %v5490_v26, %v2381_v2  ;;  %v2394_v40 = vsub.f32 %v5497_v22, %v2393_v50  ;;  %v2921_v30 = vand.u32 4294901760, %v5506_v51  ;;  %v2933_v32 = vand.u32 4294901760, %v5515_v31  ;;  %v55_v26 = vld [vmem:[%s6202_s2 + $0x8] sm:$0xff] }
  0x2b   :  { %478 = vmatprep.mubr.f32.mxu0 %v6214_v3  ;;  %4738 = vmatpush1.bf16.msra.mxu0 %v5393_v36  ;;  %v2377_v48 = vand.u32 4294901760, %v2376_v53  ;;  %v2916_v52 = vsub.f32 %v5501_v60, %v2915_v29  ;;  %v2389_v36 = vand.u32 4294901760, %v2388_v54  ;;  %v2928_v35 = vsub.f32 %v5503_v0, %v2927_v45 }
  0x2c   :  { %1018 = vmatprep.mubr.f32.mxu1 %v6214_v3  ;;  %4762 = vmatpush1.bf16.msra.mxu1 %v5424_v14  ;;  %v2383_v11 = vand.u32 4294901760, %v2382_v39  ;;  %v2395_v10 = vand.u32 4294901760, %v2394_v40  ;;  %v2922_v53 = vsub.f32 %v5506_v51, %v2921_v30  ;;  %v2934_v19 = vsub.f32 %v5515_v31, %v2933_v32  ;;  %v51_v40 = vld [vmem:[%s6200_s0 + $0xe8] sm:$0x1]  ;;  %v52_v39 = vld [vmem:[%s6200_s0 + $0xf0] sm:$0x1] }
  0x2d   :  { %4740 = vmatprep.subr.bf16.mxu0 %v5175_v20  ;;  %4764 = vmatprep.subr.bf16.mxu1 %v5181_v24  ;;  %v2917_v14 = vand.u32 4294901760, %v2916_v52  ;;  %v5541_v20 = vpack.c.bf16 %v2389_v36, %v2377_v48  ;;  %v2929_v54 = vand.u32 4294901760, %v2928_v35  ;;  %v50_v35 = vld [vmem:[%s6200_s0 + $0xe0] sm:$0x1]  ;;  %v5567_v36 = vpack.c.bf16 %v2393_v50, %v2381_v2 }
  0x2e   :  { %482 = vmatmul.mubr.f32.gmra.mrb[2].mxu0 %v5246_v62  ;;  %1022 = vmatmul.mubr.f32.gmra.mrb[2].mxu1 %v5246_v62  ;;  %v5543_v24 = vpack.c.bf16 %v2395_v10, %v2383_v11  ;;  %v2923_v52 = vand.u32 4294901760, %v2922_v53  ;;  %v2935_v6 = vand.u32 4294901760, %v2934_v19  ;;  %v35_v10 = vld [vmem:[%s6200_s0 + $0x68] sm:$0xff]  ;;  %v34_v11 = vld [vmem:[%s6200_s0 + $0x60] sm:$0xff]  ;;  %v5565_v19 = vpack.c.bf16 %v2387_v58, %v2375_v25  ;;  %v37_v53 = vld [vmem:[%s6200_s0 + $0x78] sm:$0xff] }
  0x2f   :  { %564 = vmatprep.mubr.f32.mxu0 %v6214_v3  ;;  %1104 = vmatprep.mubr.f32.mxu1 %v6214_v3  ;;  %v5563_v48 = vpack.c.bf16 %v2929_v54, %v2917_v14  ;;  %6237 = vst [vmem:[#allocation11_spill] sm:$0xff] %v5567_v36  ;;  %v5582_v58 = vpack.c.bf16 %v2927_v45, %v2915_v29  ;;  %v114_v50 = vsel %vm73_vm0, %v51_v40, 0  ;;  %v3362_v14 = vand.u32 4294901760, %v35_v10 }
  0x30   :  { %6236 = vst [vmem:[#allocation10_spill] sm:$0xff] %v5565_v19  ;;  %v5580_v25 = vpack.c.bf16 %v2935_v6, %v2923_v52  ;;  %v5584_v2 = vpack.c.bf16 %v2933_v32, %v2921_v30  ;;  %v3366_v54 = vand.u32 4294901760, %v114_v50  ;;  %v111_v9 = vsel %vm73_vm0, %v50_v35, 0  ;;  %v36_v6 = vld [vmem:[%s6200_s0 + $0x70] sm:$0xff] }
  0x31   :  { %6238 = vst [vmem:[#allocation12_spill] sm:$0xff] %v5582_v58  ;;  %v3364_v36 = vand.u32 4294901760, %v34_v11  ;;  %v3368_v32 = vand.u32 4294901760, %v111_v9  ;;  %v120_v45 = vsel %vm73_vm0, %v53_v27, 0  ;;  %v3902_v29 = vand.u32 4294901760, %v37_v53 }
  0x32   :  { %566 = vmatmul.mubr.f32.vlgmr.msra.gmra.mrb[0].mxu0 %v5198_v34  ;;  %1106 = vmatmul.mubr.f32.vlgmr.msra.gmra.mrb[0].mxu1 %v5198_v34  ;;  %6239 = vst [vmem:[#allocation13_spill] sm:$0xff] %v5584_v2  ;;  %v117_v30 = vsel %vm73_vm0, %v52_v39, 0  ;;  %v5601_v40 = vsub.f32 %v35_v10, %v3362_v14  ;;  %v5603_v52 = vsub.f32 %v114_v50, %v3366_v54  ;;  %v3906_v35 = vand.u32 4294901760, %v120_v45 }
  0x33   :  { %571 = vmatprep.mubr.f32.mxu0 %v6214_v3  ;;  %4742 = vmatpush1.bf16.msra.mxu0 %v5187_v28  ;;  %v5599_v28 = vpack.c.bf16 %v3366_v54, %v3362_v14  ;;  %v5610_v27 = vpack.c.bf16 %v3368_v32, %v3364_v36  ;;  %v5612_v39 = vsub.f32 %v34_v11, %v3364_v36  ;;  %v6242_v10 = vmov 0.0  }
  0x34   :  { %1111 = vmatprep.mubr.f32.mxu1 %v6214_v3  ;;  %4766 = vmatpush1.bf16.msra.mxu1 %v5203_v37  ;;  %v54_v37 = vld [vmem:[%s6202_s2] sm:$0xff]  ;;  %v5614_v3 = vsub.f32 %v111_v9, %v3368_v32  ;;  %v5618_v50 = vpack.c.bf16 %v3906_v35, %v3902_v29  ;;  %v5620_v14 = vsub.f32 %v37_v53, %v3902_v29  ;;  %v3908_v2 = vand.u32 4294901760, %v117_v30 }
  0x35   :  { %4768 = vmatprep.subr.bf16.mxu0 %v5430_v21  ;;  %4792 = vmatprep.subr.bf16.mxu1 %v5444_v38  ;;  %6240 = vst [vmem:[#allocation14_spill] sm:$0xff] %v5599_v28  ;;  %6241 = vst [vmem:[#allocation15_spill] sm:$0xff] %v5610_v27  ;;  %v3904_v28 = vand.u32 4294901760, %v36_v6  ;;  %v5622_v54 = vsub.f32 %v120_v45, %v3906_v35  ;;  %v5108_v58 = vmov 0   ;;  %v3455_v11 = vand.u32 4294901760, %v5601_v40 }
  0x36   :  { %573 = vmatmul.mubr.f32.gmra.mrb[2].mxu0 %v5226_v47  ;;  %1113 = vmatmul.mubr.f32.gmra.mrb[2].mxu1 %v5226_v47  ;;  %6243 = vst [vmem:[#allocation16_spill] sm:$0xff] %v5618_v50  ;;  %v3467_v9 = vand.u32 4294901760, %v5603_v52  ;;  %v3461_v36 = vand.u32 4294901760, %v5612_v39  ;;  %v5631_v27 = vsub.f32 %v117_v30, %v3908_v2  ;;  %v3473_v53 = vand.u32 4294901760, %v5614_v3 }
  0x37   :  { %647 = vmatprep.mubr.f32.mxu0 %v6242_v10  ;;  %1187 = vmatprep.mubr.f32.mxu1 %v6242_v10  ;;  %v5624_v19 = vsub.f32 %v36_v6, %v3904_v28  ;;  %v5629_v32 = vpack.c.bf16 %v3908_v2, %v3904_v28  ;;  %v3995_v45 = vand.u32 4294901760, %v5620_v14  ;;  %v3456_v6 = vsub.f32 %v5601_v40, %v3455_v11 }
  0x38   :  { %5105 = vset.pattern.permute.xlu0 %v5108_v58  ;;  %5106 = vset.pattern.permute.xlu1 %v5108_v58  ;;  %v3468_v29 = vsub.f32 %v5603_v52, %v3467_v9  ;;  %v3462_v35 = vsub.f32 %v5612_v39, %v3461_v36  ;;  %v4007_v58 = vand.u32 4294901760, %v5622_v54  ;;  %v3474_v2 = vsub.f32 %v5614_v3, %v3473_v53 }
  0x39   :  { %58 = vperm.xlu0 %5105, %v54_v37   ;;  %6244 = vst [vmem:[#allocation17_spill] sm:$0xff] %v5629_v32  ;;  %v3996_v30 = vsub.f32 %v5620_v14, %v3995_v45  ;;  %v4001_v28 = vand.u32 4294901760, %v5624_v19  ;;  %v4013_v37 = vand.u32 4294901760, %v5631_v27  ;;  %v3457_v32 = vand.u32 4294901760, %v3456_v6 }
  0x3a   :  { %649 = vmatmul.mubr.f32.vlgmr.msra.gmra.mrb[0].mxu0 %v5198_v34  ;;  %1189 = vmatmul.mubr.f32.vlgmr.msra.gmra.mrb[0].mxu1 %v5198_v34  ;;  %v3469_v50 = vand.u32 4294901760, %v3468_v29  ;;  %v3463_v51 = vand.u32 4294901760, %v3462_v35  ;;  %v4008_v31 = vsub.f32 %v5622_v54, %v4007_v58  ;;  %v3475_v22 = vand.u32 4294901760, %v3474_v2 }
  0x3b   :  { %654 = vmatprep.mubr.f32.mxu0 %v6242_v10  ;;  %1194 = vmatprep.mubr.f32.mxu1 %v6242_v10  ;;  %v3997_v60 = vand.u32 4294901760, %v3996_v30  ;;  %v4002_v0 = vsub.f32 %v5624_v19, %v4001_v28  ;;  %v4014_v23 = vsub.f32 %v5631_v27, %v4013_v37  ;;  %v4895_v18 = vpack.c.bf16 %v5622_v54, %v5620_v14 }
  0x3c   :  { %4770 = vmatpush1.bf16.msra.mxu0 %v5442_v33  ;;  %4794 = vmatpush1.bf16.msra.mxu1 %v5454_v8  ;;  %v5659_v6 = vpack.c.bf16 %v3469_v50, %v3457_v32  ;;  %v4009_v29 = vand.u32 4294901760, %v4008_v31  ;;  %v5667_v35 = vpack.c.bf16 %v3475_v22, %v3463_v51  ;;  %v4897_v31 = vpack.c.bf16 %v5631_v27, %v5624_v19  ;;  %v5938_v19 = vld [vmem:[%s6203_s3 + $0x80] sm:$0xff]  ;;  %v5945_v27 = vld [vmem:[%s6203_s3 + $0x8] sm:$0xff] }
  0x3d   :  { %4772 = vmatprep.subr.bf16.mxu0 %v5456_v13  ;;  %4796 = vmatprep.subr.bf16.mxu1 %v5468_v43  ;;  %v4003_v2 = vand.u32 4294901760, %v4002_v0  ;;  %v4015_v30 = vand.u32 4294901760, %v4014_v23  ;;  %v5675_v32 = vpack.c.bf16 %v3467_v9, %v3455_v11  ;;  %v5677_v43 = vpack.c.bf16 %v3473_v53, %v3461_v36 }
  0x3e   :  { %656 = vmatmul.mubr.f32.gmra.mrb[2].mxu0 %v5226_v47  ;;  %1196 = vmatmul.mubr.f32.gmra.mrb[2].mxu1 %v5226_v47  ;;  %v5671_v50 = vpack.c.bf16 %v4009_v29, %v3997_v60  ;;  %v4799_v13 = vpack.c.bf16 %v5352_v4, %v5348_v63  ;;  %v5683_v0 = vpack.c.bf16 %v4007_v58, %v3995_v45  ;;  %v6247_v51 = vand.u32 4294901760, %v5333_v57  ;;  %v6268_v29 = vld [vmem:[#allocation11_spill] sm:$0xff] }
  0x3f   :  { %1270 = vmatprep.mubr.f32.mxu0 %v6242_v10  ;;  %1810 = vmatprep.mubr.f32.mxu1 %v6242_v10  ;;  %v5681_v22 = vpack.c.bf16 %v4015_v30, %v4003_v2  ;;  %v5685_v23 = vpack.c.bf16 %v4013_v37, %v4001_v28  ;;  %v4801_v60 = vpack.c.bf16 %v5370_v15, %v5359_v7  ;;  %v6248_v9 = vand.u32 4294901760, %v5348_v63  ;;  %v6266_v28 = vld [vmem:[#allocation10_spill] sm:$0xff]  ;;  %v6267_v37 = vld [vmem:[#allocation12_spill] sm:$0xff] }
  0x40   :  { %63 = vperm.xlu0 %5105, %v55_v26   ;;  %v6245_v26 = vpack.c.bf16 %v5333_v57, %v5316_v46  ;;  %v6249_v36 = vand.u32 4294901760, %v5352_v4  ;;  %v6251_v57 = vand.u32 4294901760, %v5345_v61  ;;  %v6252_v4 = vand.u32 4294901760, %v5359_v7 }
  0x41   :  { %v6253_v45 = vand.u32 4294901760, %v5370_v15  ;;  %v6257_v15 = vld [vmem:[#allocation7_spill] sm:$0xff] }
  0x42   :  { %1276 = vmatmul.mubr.f32.vlgmr.msra.gmra.mrb[4].mxu0 %v5249_v1  ;;  %1816 = vmatmul.mubr.f32.vlgmr.msra.gmra.mrb[4].mxu1 %v5249_v1  ;;  %v4807_v53 = vpack.c.bf16 %v6249_v36, %v6248_v9 }
  0x43   :  { %1281 = vmatprep.mubr.f32.mxu0 %v6242_v10  ;;  %4774 = vmatpush1.bf16.msra.mxu0 %v5466_v42  ;;  %v4777_v42 = vpack.c.bf16 %v5345_v61, %v5340_v59  ;;  %v4809_v58 = vpack.c.bf16 %v6253_v45, %v6252_v4  ;;  %v6255_v61 = vld [vmem:[#allocation2_spill] sm:$0xff] }
  0x44   :  { %1821 = vmatprep.mubr.f32.mxu1 %v6242_v10  ;;  %4798 = vmatpush1.bf16.msra.mxu1 %v5470_v44  ;;  %v6246_v44 = vand.u32 4294901760, %v5316_v46  ;;  %v6250_v46 = vand.u32 4294901760, %v5340_v59  ;;  %v6254_v59 = vld [vmem:[#allocation3_spill] sm:$0xff]  ;;  %v5992_v4 = vld [vmem:[%s6203_s3 + $0xc0] sm:$0xff] }
  0x45   :  { %4776 = vmatprep.subr.bf16.mxu0 %v6245_v26  ;;  %4800 = vmatprep.subr.bf16.mxu1 %v4799_v13  ;;  %v6256_v7 = vpack.c.bf16 %v6254_v59, %v6255_v61  ;;  %v6269_v13 = vld [vmem:[#allocation13_spill] sm:$0xff]  ;;  %v5998_v61 = vld [vmem:[%s6203_s3 + $0x48] sm:$0xff] }
  0x46   :  { %1287 = vmatmul.mubr.f32.gmra.mrb[6].mxu0 %v5285_v17  ;;  %1827 = vmatmul.mubr.f32.gmra.mrb[6].mxu1 %v5285_v17  ;;  %v4783_v11 = vpack.c.bf16 %v6247_v51, %v6246_v44  ;;  %v4785_v63 = vpack.c.bf16 %v6251_v57, %v6250_v46 }
  0x47   :  { %1377 = vmatprep.mubr.f32.mxu0 %v6242_v10  ;;  %1917 = vmatprep.mubr.f32.mxu1 %v6242_v10 }
  0x4a   :  { %1379 = vmatmul.mubr.f32.vlgmr.msra.gmra.mrb[4].mxu0 %v5198_v34  ;;  %1919 = vmatmul.mubr.f32.vlgmr.msra.gmra.mrb[4].mxu1 %v5198_v34 }
  0x4b   :  { %1384 = vmatprep.mubr.f32.mxu0 %v6242_v10  ;;  %4778 = vmatpush1.bf16.msra.mxu0 %v4777_v42  ;;  %v5971_v42 = vld [vmem:[%s6203_s3 + $0x18] sm:$0xff] }
  0x4c   :  { %1924 = vmatprep.mubr.f32.mxu1 %v6242_v10  ;;  %4802 = vmatpush1.bf16.msra.mxu1 %v4801_v60  ;;  %v5976_v60 = vld [vmem:[%s6203_s3 + $0x98] sm:$0xff] }
  0x4d   :  { %4780 = vmatprep.subr.bf16.mxu0 %v5430_v21  ;;  %4804 = vmatprep.subr.bf16.mxu1 %v5444_v38 }
  0x4e   :  { %1386 = vmatmul.mubr.f32.gmra.mrb[6].mxu0 %v5226_v47  ;;  %1926 = vmatmul.mubr.f32.gmra.mrb[6].mxu1 %v5226_v47 }
  0x4f   :  { %1464 = vmatprep.mubr.f32.mxu0 %v6242_v10  ;;  %2004 = vmatprep.mubr.f32.mxu1 %v6242_v10 }
  0x52   :  { %1467 = vmatmul.mubr.f32.vlgmr.msra.gmra.mrb[4].mxu0 %v5210_v41  ;;  %2007 = vmatmul.mubr.f32.vlgmr.msra.gmra.mrb[4].mxu1 %v5210_v41 }
  0x53   :  { %1472 = vmatprep.mubr.f32.mxu0 %v6242_v10  ;;  %4782 = vmatpush1.bf16.msra.mxu0 %v5442_v33 }
  0x54   :  { %2012 = vmatprep.mubr.f32.mxu1 %v6242_v10  ;;  %4806 = vmatpush1.bf16.msra.mxu1 %v5454_v8 }
  0x55   :  { %4784 = vmatprep.subr.bf16.mxu0 %v4783_v11  ;;  %4808 = vmatprep.subr.bf16.mxu1 %v4807_v53 }
  0x56   :  { %1475 = vmatmul.mubr.f32.gmra.mrb[6].mxu0 %v5234_v55  ;;  %2015 = vmatmul.mubr.f32.gmra.mrb[6].mxu1 %v5234_v55 }
  0x57   :  { %1549 = vmatprep.mubr.f32.mxu0 %v6242_v10  ;;  %2089 = vmatprep.mubr.f32.mxu1 %v6242_v10 }
  0x5a   :  { %1553 = vmatmul.mubr.f32.vlgmr.msra.gmra.mrb[4].mxu0 %v5230_v49  ;;  %2093 = vmatmul.mubr.f32.vlgmr.msra.gmra.mrb[4].mxu1 %v5230_v49 }
  0x5b   :  { %1558 = vmatprep.mubr.f32.mxu0 %v6242_v10  ;;  %4786 = vmatpush1.bf16.msra.mxu0 %v4785_v63  ;;  %v5987_v63 = vld [vmem:[%s6203_s3 + $0x40] sm:$0xff] }
  0x5c   :  { %2098 = vmatprep.mubr.f32.mxu1 %v6242_v10  ;;  %4810 = vmatpush1.bf16.msra.mxu1 %v4809_v58 }
  0x5d   :  { %4788 = vmatprep.subr.bf16.mxu0 %v5430_v21  ;;  %4812 = vmatprep.subr.bf16.mxu1 %v5444_v38  ;;  %v6258_v21 = vld [vmem:[#allocation6_spill] sm:$0xff]  ;;  %v6260_v38 = vld [vmem:[#allocation5_spill] sm:$0xff] }
  0x5e   :  { %1562 = vmatmul.mubr.f32.gmra.mrb[6].mxu0 %v5246_v62  ;;  %2102 = vmatmul.mubr.f32.gmra.mrb[6].mxu1 %v5246_v62 }
  0x5f   :  { %1644 = vmatprep.mubr.f32.mxu0 %v6242_v10  ;;  %2184 = vmatprep.mubr.f32.mxu1 %v6242_v10 }
  0x62   :  { %1646 = vmatmul.mubr.f32.vlgmr.msra.gmra.mrb[4].mxu0 %v5198_v34  ;;  %2186 = vmatmul.mubr.f32.vlgmr.msra.gmra.mrb[4].mxu1 %v5198_v34 }
  0x63   :  { %1651 = vmatprep.mubr.f32.mxu0 %v6242_v10  ;;  %4790 = vmatpush1.bf16.msra.mxu0 %v5442_v33  ;;  %v6259_v33 = vpack.c.bf16 %v6257_v15, %v6258_v21 }
  0x64   :  { %2191 = vmatprep.mubr.f32.mxu1 %v6242_v10  ;;  %4814 = vmatpush1.bf16.msra.mxu1 %v5454_v8  ;;  %v6261_v8 = vld [vmem:[#allocation4_spill] sm:$0xff] }
  0x65   :  { %4816 = vmatprep.subr.bf16.mxu0 %v5486_v56  ;;  %4840 = vmatprep.subr.bf16.mxu1 %v5499_v16 }
  0x66   :  { %1653 = vmatmul.mubr.f32.gmra.mrb[6].mxu0 %v5226_v47  ;;  %2193 = vmatmul.mubr.f32.gmra.mrb[6].mxu1 %v5226_v47 }
  0x67   :  { %1727 = vmatprep.mubr.f32.mxu0 %v6242_v10  ;;  %2267 = vmatprep.mubr.f32.mxu1 %v6242_v10 }
  0x6a   :  { %1729 = vmatmul.mubr.f32.vlgmr.msra.gmra.mrb[4].mxu0 %v5198_v34  ;;  %2269 = vmatmul.mubr.f32.vlgmr.msra.gmra.mrb[4].mxu1 %v5198_v34 }
  0x6b   :  { %1734 = vmatprep.mubr.f32.mxu0 %v6242_v10  ;;  %2274 = vmatprep.mubr.f32.mxu1 %v6242_v10 }
  0x6c   :  { %4818 = vmatpush1.bf16.msra.mxu0 %v5495_v12  ;;  %4842 = vmatpush1.bf16.msra.mxu1 %v5513_v5 }
  0x6d   :  { %4820 = vmatprep.subr.bf16.mxu0 %v5541_v20  ;;  %4844 = vmatprep.subr.bf16.mxu1 %v5563_v48  ;;  %v6262_v20 = vpack.c.bf16 %v6260_v38, %v6261_v8  ;;  %v6264_v48 = vld [vmem:[#allocation8_spill] sm:$0xff] }
  0x6e   :  { %1736 = vmatmul.mubr.f32.gmra.mrb[6].mxu0 %v5226_v47  ;;  %2276 = vmatmul.mubr.f32.gmra.mrb[6].mxu1 %v5226_v47 }
  0x6f   :  { %2350 = vmatprep.mubr.f32.mxu0 %v6242_v10  ;;  %2890 = vmatprep.mubr.f32.mxu1 %v6242_v10 }
  0x72   :  { %2356 = vmatmul.mubr.f32.vlgmr.msra.gmra.mrb[8].mxu0 %v5249_v1  ;;  %2896 = vmatmul.mubr.f32.vlgmr.msra.gmra.mrb[8].mxu1 %v5249_v1 }
  0x73   :  { %2361 = vmatprep.mubr.f32.mxu0 %v6242_v10  ;;  %4822 = vmatpush1.bf16.msra.mxu0 %v5543_v24  ;;  %v6263_v24 = vld [vmem:[#allocation9_spill] sm:$0xff] }
  0x74   :  { %2901 = vmatprep.mubr.f32.mxu1 %v6242_v10  ;;  %4846 = vmatpush1.bf16.msra.mxu1 %v5580_v25  ;;  %v6265_v25 = vpack.c.bf16 %v6263_v24, %v6264_v48  ;;  %v6011_v24 = vld [vmem:[%s6203_s3 + $0x50] sm:$0xff] }
  0x75   :  { %4824 = vmatprep.subr.bf16.mxu0 %v6256_v7  ;;  %4848 = vmatprep.subr.bf16.mxu1 %v6259_v33  ;;  %v6003_v7 = vld [vmem:[%s6203_s3 + $0xc8] sm:$0xff]  ;;  %v6016_v48 = vld [vmem:[%s6203_s3 + $0xd0] sm:$0xff] }
  0x76   :  { %2367 = vmatmul.mubr.f32.gmra.mrb[10].mxu0 %v5285_v17  ;;  %2907 = vmatmul.mubr.f32.gmra.mrb[10].mxu1 %v5285_v17 }
  0x77   :  { %2457 = vmatprep.mubr.f32.mxu0 %v6242_v10  ;;  %2997 = vmatprep.mubr.f32.mxu1 %v6242_v10 }
  0x7a   :  { %2459 = vmatmul.mubr.f32.vlgmr.msra.gmra.mrb[8].mxu0 %v5198_v34  ;;  %2999 = vmatmul.mubr.f32.vlgmr.msra.gmra.mrb[8].mxu1 %v5198_v34 }
  0x7b   :  { %2464 = vmatprep.mubr.f32.mxu0 %v6242_v10  ;;  %4826 = vmatpush1.bf16.msra.mxu0 %v6262_v20 }
  0x7c   :  { %3004 = vmatprep.mubr.f32.mxu1 %v6242_v10  ;;  %4850 = vmatpush1.bf16.msra.mxu1 %v6265_v25 }
  0x7d   :  { %4828 = vmatprep.subr.bf16.mxu0 %v5486_v56  ;;  %4852 = vmatprep.subr.bf16.mxu1 %v5499_v16 }
  0x7e   :  { %2466 = vmatmul.mubr.f32.gmra.mrb[10].mxu0 %v5226_v47  ;;  %3006 = vmatmul.mubr.f32.gmra.mrb[10].mxu1 %v5226_v47 }
  0x7f   :  { %2544 = vmatprep.mubr.f32.mxu0 %v6242_v10  ;;  %3084 = vmatprep.mubr.f32.mxu1 %v6242_v10 }
  0x82   :  { %2547 = vmatmul.mubr.f32.vlgmr.msra.gmra.mrb[8].mxu0 %v5210_v41  ;;  %3087 = vmatmul.mubr.f32.vlgmr.msra.gmra.mrb[8].mxu1 %v5210_v41 }
  0x83   :  { %2552 = vmatprep.mubr.f32.mxu0 %v6242_v10  ;;  %4830 = vmatpush1.bf16.msra.mxu0 %v5495_v12 }
  0x84   :  { %3092 = vmatprep.mubr.f32.mxu1 %v6242_v10  ;;  %4854 = vmatpush1.bf16.msra.mxu1 %v5513_v5 }
  0x85   :  { %4832 = vmatprep.subr.bf16.mxu0 %v6266_v28  ;;  %4856 = vmatprep.subr.bf16.mxu1 %v6267_v37 }
  0x86   :  { %2555 = vmatmul.mubr.f32.gmra.mrb[10].mxu0 %v5234_v55  ;;  %3095 = vmatmul.mubr.f32.gmra.mrb[10].mxu1 %v5234_v55 }
  0x87   :  { %2629 = vmatprep.mubr.f32.mxu0 %v6242_v10  ;;  %3169 = vmatprep.mubr.f32.mxu1 %v6242_v10 }
  0x8a   :  { %2633 = vmatmul.mubr.f32.vlgmr.msra.gmra.mrb[8].mxu0 %v5230_v49  ;;  %3173 = vmatmul.mubr.f32.vlgmr.msra.gmra.mrb[8].mxu1 %v5230_v49 }
  0x8b   :  { %2638 = vmatprep.mubr.f32.mxu0 %v6242_v10  ;;  %4834 = vmatpush1.bf16.msra.mxu0 %v6268_v29 }
  0x8c   :  { %3178 = vmatprep.mubr.f32.mxu1 %v6242_v10  ;;  %4858 = vmatpush1.bf16.msra.mxu1 %v6269_v13 }
  0x8d   :  { %4836 = vmatprep.subr.bf16.mxu0 %v5486_v56  ;;  %4860 = vmatprep.subr.bf16.mxu1 %v5499_v16  ;;  %v6270_v56 = vld [vmem:[#allocation14_spill] sm:$0xff]  ;;  %v6271_v16 = vld [vmem:[#allocation16_spill] sm:$0xff] }
  0x8e   :  { %2642 = vmatmul.mubr.f32.gmra.mrb[10].mxu0 %v5246_v62  ;;  %3182 = vmatmul.mubr.f32.gmra.mrb[10].mxu1 %v5246_v62 }
  0x8f   :  { %2724 = vmatprep.mubr.f32.mxu0 %v6242_v10  ;;  %3264 = vmatprep.mubr.f32.mxu1 %v6242_v10 }
  0x92   :  { %2726 = vmatmul.mubr.f32.vlgmr.msra.gmra.mrb[8].mxu0 %v5198_v34  ;;  %3266 = vmatmul.mubr.f32.vlgmr.msra.gmra.mrb[8].mxu1 %v5198_v34 }
  0x93   :  { %2731 = vmatprep.mubr.f32.mxu0 %v6242_v10  ;;  %4838 = vmatpush1.bf16.msra.mxu0 %v5495_v12  ;;  %v6272_v12 = vld [vmem:[#allocation15_spill] sm:$0xff] }
  0x94   :  { %3271 = vmatprep.mubr.f32.mxu1 %v6242_v10  ;;  %4862 = vmatpush1.bf16.msra.mxu1 %v5513_v5  ;;  %v6273_v5 = vld [vmem:[#allocation17_spill] sm:$0xff] }
  0x95   :  { %4864 = vmatprep.subr.bf16.mxu0 %v6270_v56  ;;  %4888 = vmatprep.subr.bf16.mxu1 %v6271_v16 }
  0x96   :  { %2733 = vmatmul.mubr.f32.gmra.mrb[10].mxu0 %v5226_v47  ;;  %3273 = vmatmul.mubr.f32.gmra.mrb[10].mxu1 %v5226_v47 }
  0x97   :  { %2807 = vmatprep.mubr.f32.mxu0 %v6242_v10  ;;  %3347 = vmatprep.mubr.f32.mxu1 %v6242_v10 }
  0x9a   :  { %2809 = vmatmul.mubr.f32.vlgmr.msra.gmra.mrb[8].mxu0 %v5198_v34  ;;  %3349 = vmatmul.mubr.f32.vlgmr.msra.gmra.mrb[8].mxu1 %v5198_v34 }
  0x9b   :  { %2814 = vmatprep.mubr.f32.mxu0 %v6242_v10  ;;  %3354 = vmatprep.mubr.f32.mxu1 %v6242_v10 }
  0x9c   :  { %4866 = vmatpush1.bf16.msra.mxu0 %v6272_v12  ;;  %4890 = vmatpush1.bf16.msra.mxu1 %v6273_v5 }
  0x9d   :  { %4868 = vmatprep.subr.bf16.mxu0 %v5659_v6  ;;  %4892 = vmatprep.subr.bf16.mxu1 %v5671_v50  ;;  %v6274_v6 = vpack.c.bf16 %v5603_v52, %v5601_v40  ;;  %v5959_v50 = vld [vmem:[%s6203_s3 + $0x10] sm:$0xff] }
  0x9e   :  { %2816 = vmatmul.mubr.f32.gmra.mrb[10].mxu0 %v5226_v47  ;;  %3356 = vmatmul.mubr.f32.gmra.mrb[10].mxu1 %v5226_v47 }
  0x9f   :  { %3430 = vmatprep.mubr.f32.mxu0 %v6242_v10  ;;  %3970 = vmatprep.mubr.f32.mxu1 %v6242_v10 }
  0xa2   :  { %3436 = vmatmul.mubr.f32.vlgmr.msra.gmra.mrb[12].mxu0 %v5249_v1  ;;  %3976 = vmatmul.mubr.f32.vlgmr.msra.gmra.mrb[12].mxu1 %v5249_v1  ;;  %v6275_v1 = vpack.c.bf16 %v5614_v3, %v5612_v39  ;;  %v5950_v39 = vld [vmem:[%s6203_s3 + $0x88] sm:$0xff] }
  0xa3   :  { %3441 = vmatprep.mubr.f32.mxu0 %v6242_v10  ;;  %4870 = vmatpush1.bf16.msra.mxu0 %v5667_v35 }
  0xa4   :  { %3981 = vmatprep.mubr.f32.mxu1 %v6242_v10  ;;  %4894 = vmatpush1.bf16.msra.mxu1 %v5681_v22 }
  0xa5   :  { %4872 = vmatprep.subr.bf16.mxu0 %v6274_v6  ;;  %4896 = vmatprep.subr.bf16.mxu1 %v4895_v18 }
  0xa6   :  { %3447 = vmatmul.mubr.f32.gmra.mrb[14].mxu0 %v5285_v17  ;;  %3987 = vmatmul.mubr.f32.gmra.mrb[14].mxu1 %v5285_v17 }
  0xa7   :  { %3537 = vmatprep.mubr.f32.mxu0 %v6242_v10  ;;  %4077 = vmatprep.mubr.f32.mxu1 %v6242_v10 }
  0xaa   :  { %3539 = vmatmul.mubr.f32.vlgmr.msra.gmra.mrb[12].mxu0 %v5198_v34  ;;  %4079 = vmatmul.mubr.f32.vlgmr.msra.gmra.mrb[12].mxu1 %v5198_v34 }
  0xab   :  { %3544 = vmatprep.mubr.f32.mxu0 %v6242_v10  ;;  %4874 = vmatpush1.bf16.msra.mxu0 %v6275_v1 }
  0xac   :  { %4084 = vmatprep.mubr.f32.mxu1 %v6242_v10  ;;  %4898 = vmatpush1.bf16.msra.mxu1 %v4897_v31  ;;  %v5964_v31 = vld [vmem:[%s6203_s3 + $0x90] sm:$0xff] }
  0xad   :  { %4876 = vmatprep.subr.bf16.mxu0 %v6270_v56  ;;  %4900 = vmatprep.subr.bf16.mxu1 %v6271_v16 }
  0xae   :  { %3546 = vmatmul.mubr.f32.gmra.mrb[14].mxu0 %v5226_v47  ;;  %4086 = vmatmul.mubr.f32.gmra.mrb[14].mxu1 %v5226_v47 }
  0xaf   :  { %3624 = vmatprep.mubr.f32.mxu0 %v6242_v10  ;;  %4164 = vmatprep.mubr.f32.mxu1 %v6242_v10 }
  0xb2   :  { %3627 = vmatmul.mubr.f32.vlgmr.msra.gmra.mrb[12].mxu0 %v5210_v41  ;;  %4167 = vmatmul.mubr.f32.vlgmr.msra.gmra.mrb[12].mxu1 %v5210_v41 }
  0xb3   :  { %3632 = vmatprep.mubr.f32.mxu0 %v6242_v10  ;;  %4878 = vmatpush1.bf16.msra.mxu0 %v6272_v12 }
  0xb4   :  { %4172 = vmatprep.mubr.f32.mxu1 %v6242_v10  ;;  %4902 = vmatpush1.bf16.msra.mxu1 %v6273_v5 }
  0xb5   :  { %4880 = vmatprep.subr.bf16.mxu0 %v5675_v32  ;;  %4904 = vmatprep.subr.bf16.mxu1 %v5683_v0 }
  0xb6   :  { %3635 = vmatmul.mubr.f32.gmra.mrb[14].mxu0 %v5234_v55  ;;  %4175 = vmatmul.mubr.f32.gmra.mrb[14].mxu1 %v5234_v55 }
  0xb7   :  { %3709 = vmatprep.mubr.f32.mxu0 %v6242_v10  ;;  %4249 = vmatprep.mubr.f32.mxu1 %v6242_v10 }
  0xb8   :  { %v5926_v3 = vpop.permute.xlu0 %58 }
  0xba   :  { %3713 = vmatmul.mubr.f32.vlgmr.msra.gmra.mrb[12].mxu0 %v5230_v49  ;;  %4253 = vmatmul.mubr.f32.vlgmr.msra.gmra.mrb[12].mxu1 %v5230_v49 }
  0xbb   :  { %3718 = vmatprep.mubr.f32.mxu0 %v6242_v10  ;;  %4882 = vmatpush1.bf16.msra.mxu0 %v5677_v43 }
  0xbc   :  { %4258 = vmatprep.mubr.f32.mxu1 %v6242_v10  ;;  %4906 = vmatpush1.bf16.msra.mxu1 %v5685_v23 }
  0xbd   :  { %4884 = vmatprep.subr.bf16.mxu0 %v6270_v56  ;;  %4908 = vmatprep.subr.bf16.mxu1 %v6271_v16  ;;  %v6023_v56 = vld [vmem:[%s6203_s3 + $0x58] sm:$0xff] }
  0xbe   :  { %3722 = vmatmul.mubr.f32.gmra.mrb[14].mxu0 %v5246_v62  ;;  %4262 = vmatmul.mubr.f32.gmra.mrb[14].mxu1 %v5246_v62  ;;  %v6028_v16 = vld [vmem:[%s6203_s3 + $0xd8] sm:$0xff] }
  0xbf   :  { %3804 = vmatprep.mubr.f32.mxu0 %v6242_v10  ;;  %4344 = vmatprep.mubr.f32.mxu1 %v6242_v10 }
  0xc2   :  { %3806 = vmatmul.mubr.f32.vlgmr.msra.gmra.mrb[12].mxu0 %v5198_v34  ;;  %4346 = vmatmul.mubr.f32.vlgmr.msra.gmra.mrb[12].mxu1 %v5198_v34 }
  0xc3   :  { %3811 = vmatprep.mubr.f32.mxu0 %v6242_v10  ;;  %4886 = vmatpush1.bf16.msra.mxu0 %v6272_v12 }
  0xc4   :  { %4351 = vmatprep.mubr.f32.mxu1 %v6242_v10  ;;  %4910 = vmatpush1.bf16.msra.mxu1 %v6273_v5 }
  0xc6   :  { %3813 = vmatmul.mubr.f32.gmra.mrb[14].mxu0 %v5226_v47  ;;  %4353 = vmatmul.mubr.f32.gmra.mrb[14].mxu1 %v5226_v47 }
  0xc7   :  { %3887 = vmatprep.mubr.f32.mxu0 %v6242_v10  ;;  %4427 = vmatprep.mubr.f32.mxu1 %v6242_v10 }
  0xca   :  { %3889 = vmatmul.mubr.f32.vlgmr.msra.gmra.mrb[12].mxu0 %v5198_v34  ;;  %4429 = vmatmul.mubr.f32.vlgmr.msra.gmra.mrb[12].mxu1 %v5198_v34  ;;  %v5933_v34 = vld [vmem:[%s6203_s3] sm:$0xff] }
  0xcb   :  { %3894 = vmatprep.mubr.f32.mxu0 %v6242_v10  ;;  %4434 = vmatprep.mubr.f32.mxu1 %v6242_v10  ;;  %v5952_v10 = vpop.permute.xlu0 %63 }
  0xce   :  { %3896 = vmatmul.mubr.f32.gmra.mrb[14].mxu0 %v5226_v47  ;;  %4436 = vmatmul.mubr.f32.gmra.mrb[14].mxu1 %v5226_v47 }
 0x10d   :  { %v650_v41 = vpop.f32.mrb[0].mxu0  ;;  %v1190_v49 = vpop.f32.mrb[0].mxu1 }
 0x10e   :  { %v4911_v55 = vadd.f32 %v650_v41, %v5926_v3  ;;  %v4915_v62 = vadd.f32 %v1190_v49, %v5926_v3  ;;  %v652_v17 = vpop.f32.mrb[1].mxu0  ;;  %v1192_v18 = vpop.f32.mrb[1].mxu1 }
 0x10f   :  { %v4912_v47 = vadd.f32 %v652_v17, %v5926_v3  ;;  %v4916_v40 = vadd.f32 %v1192_v18, %v5926_v3 }
 0x110   :  { %v4442_v52 = vmax.f32 %v4911_v55, 0.0  ;;  %v4444_v14 = vmax.f32 %v4915_v62, 0.0 }
 0x111   :  { %v4443_v54 = vmax.f32 %v4912_v47, 0.0  ;;  %v657_v43 = vpop.f32.mrb[2].mxu0  ;;  %v1197_v35 = vpop.f32.mrb[2].mxu1  ;;  %v4445_v32 = vmax.f32 %v4916_v40, 0.0 }
 0x112   :  { %v4514_v2 = vmul.f32 %v5933_v34, %v4442_v52  ;;  %v4530_v30 = vmul.f32 %v5938_v19, %v4442_v52  ;;  %v659_v22 = vpop.f32.mrb[3].mxu0  ;;  %v1199_v0 = vpop.f32.mrb[3].mxu1  ;;  %v4913_v44 = vadd.f32 %v657_v43, %v5952_v10  ;;  %v4917_v51 = vadd.f32 %v1197_v35, %v5952_v10  ;;  %v6038_v43 = vld [vmem:[%s6203_s3 + $0x20] sm:$0xff] }
 0x113   :  { %v4515_v23 = vmul.f32 %v5945_v27, %v4443_v54  ;;  %v4531_v26 = vmul.f32 %v5950_v39, %v4443_v54  ;;  %v4914_v11 = vadd.f32 %v659_v22, %v5952_v10  ;;  %v4918_v9 = vadd.f32 %v1199_v0, %v5952_v10  ;;  %v6043_v35 = vld [vmem:[%s6203_s3 + $0xa0] sm:$0xff]  ;;  %v6050_v22 = vld [vmem:[%s6203_s3 + $0x28] sm:$0xff] }
 0x114   :  { %v4516_v36 = vmul.f32 %v5959_v50, %v4444_v14  ;;  %v4532_v53 = vmul.f32 %v5964_v31, %v4444_v14  ;;  %v4517_v45 = vmul.f32 %v5971_v42, %v4445_v32  ;;  %v4458_v58 = vmax.f32 %v4913_v44, 0.0  ;;  %v6055_v0 = vld [vmem:[%s6203_s3 + $0xa8] sm:$0xff] }
 0x115   :  { %v4546_v46 = vadd.f32 %v4515_v23, %v4514_v2  ;;  %v4564_v57 = vadd.f32 %v4531_v26, %v4530_v30  ;;  %v4459_v59 = vmax.f32 %v4914_v11, 0.0  ;;  %v4533_v15 = vmul.f32 %v5976_v60, %v4445_v32 }
 0x116   :  { %v4460_v38 = vmax.f32 %v4917_v51, 0.0  ;;  %v4522_v8 = vmul.f32 %v5987_v63, %v4458_v58  ;;  %v4538_v20 = vmul.f32 %v5992_v4, %v4458_v58  ;;  %v4461_v25 = vmax.f32 %v4918_v9, 0.0 }
 0x117   :  { %v4547_v21 = vadd.f32 %v4546_v46, %v4516_v36  ;;  %v4565_v33 = vadd.f32 %v4564_v57, %v4532_v53  ;;  %v4523_v29 = vmul.f32 %v5998_v61, %v4459_v59  ;;  %v4539_v13 = vmul.f32 %v6003_v7, %v4459_v59 }
 0x118   :  { %v4524_v12 = vmul.f32 %v6011_v24, %v4460_v38  ;;  %v4540_v5 = vmul.f32 %v6016_v48, %v4460_v38  ;;  %v4525_v41 = vmul.f32 %v6023_v56, %v4461_v25  ;;  %v4541_v49 = vmul.f32 %v6028_v16, %v4461_v25  ;;  %v6076_v38 = vld [vmem:[%s6203_s3 + $0xe0] sm:$0xff]  ;;  %v6083_v25 = vld [vmem:[%s6203_s3 + $0xb0] sm:$0xff] }
 0x119   :  { %v4548_v28 = vadd.f32 %v4547_v21, %v4517_v45  ;;  %v4566_v37 = vadd.f32 %v4565_v33, %v4533_v15  ;;  %v4555_v6 = vadd.f32 %v4523_v29, %v4522_v8  ;;  %v4573_v1 = vadd.f32 %v4539_v13, %v4538_v20  ;;  %v6066_v21 = vld [vmem:[%s6203_s3 + $0x30] sm:$0xff]  ;;  %v6071_v33 = vld [vmem:[%s6203_s3 + $0x60] sm:$0xff]  ;;  %v6093_v29 = vld [vmem:[%s6203_s3 + $0xe8] sm:$0xff] }
 0x11b   :  { %v4556_v55 = vadd.f32 %v4555_v6, %v4524_v12  ;;  %v4574_v62 = vadd.f32 %v4573_v1, %v4540_v5 }
 0x11d   :  { %v4557_v17 = vadd.f32 %v4556_v55, %v4525_v41  ;;  %v4575_v18 = vadd.f32 %v4574_v62, %v4541_v49  ;;  %v6099_v41 = vld [vmem:[%s6203_s3 + $0xb8] sm:$0xff] }
 0x13d   :  { %v1730_v47 = vpop.f32.mrb[4].mxu0  ;;  %v2270_v40 = vpop.f32.mrb[4].mxu1 }
 0x13e   :  { %v4919_v52 = vadd.f32 %v1730_v47, %v5926_v3  ;;  %v1732_v14 = vpop.f32.mrb[5].mxu0  ;;  %v2272_v54 = vpop.f32.mrb[5].mxu1  ;;  %v4923_v2 = vadd.f32 %v2270_v40, %v5926_v3  ;;  %v6106_v47 = vld [vmem:[%s6203_s3 + $0x38] sm:$0xff] }
 0x13f   :  { %v4920_v30 = vadd.f32 %v1732_v14, %v5926_v3  ;;  %v4924_v9 = vadd.f32 %v2272_v54, %v5926_v3  ;;  %v6113_v14 = vld [vmem:[%s6203_s3 + $0x70] sm:$0xff] }
 0x140   :  { %v4446_v32 = vmax.f32 %v4919_v52, 0.0  ;;  %v4448_v46 = vmax.f32 %v4923_v2, 0.0  ;;  %v6118_v54 = vld [vmem:[%s6203_s3 + $0xf0] sm:$0xff] }
 0x141   :  { %v4447_v23 = vmax.f32 %v4920_v30, 0.0  ;;  %v1737_v26 = vpop.f32.mrb[6].mxu0  ;;  %v2277_v44 = vpop.f32.mrb[6].mxu1  ;;  %v4449_v5 = vmax.f32 %v4924_v9, 0.0 }
 0x142   :  { %v4518_v51 = vmul.f32 %v6038_v43, %v4446_v32  ;;  %v4534_v11 = vmul.f32 %v6043_v35, %v4446_v32  ;;  %v1739_v36 = vpop.f32.mrb[7].mxu0  ;;  %v2279_v53 = vpop.f32.mrb[7].mxu1  ;;  %v4921_v58 = vadd.f32 %v1737_v26, %v5952_v10  ;;  %v4925_v8 = vadd.f32 %v2277_v44, %v5952_v10 }
 0x143   :  { %v4519_v57 = vmul.f32 %v6050_v22, %v4447_v23  ;;  %v4535_v45 = vmul.f32 %v6055_v0, %v4447_v23  ;;  %v4922_v20 = vadd.f32 %v1739_v36, %v5952_v10  ;;  %v4926_v13 = vadd.f32 %v2279_v53, %v5952_v10 }
 0x144   :  { %v4549_v59 = vadd.f32 %v4548_v28, %v4518_v51  ;;  %v4567_v15 = vadd.f32 %v4566_v37, %v4534_v11  ;;  %v4462_v28 = vmax.f32 %v4921_v58, 0.0  ;;  %v6088_v37 = vld [vmem:[%s6203_s3 + $0x68] sm:$0xff]  ;;  %v4464_v62 = vmax.f32 %v4925_v8, 0.0  ;;  %v6126_v51 = vld [vmem:[%s6203_s3 + $0x78] sm:$0xff] }
 0x145   :  { %v4463_v6 = vmax.f32 %v4922_v20, 0.0  ;;  %v4520_v40 = vmul.f32 %v6066_v21, %v4448_v46  ;;  %v4536_v52 = vmul.f32 %v6083_v25, %v4448_v46  ;;  %v4465_v26 = vmax.f32 %v4926_v13, 0.0  ;;  %v6131_v11 = vld [vmem:[%s6203_s3 + $0xf8] sm:$0xff] }
 0x146   :  { %v4568_v12 = vadd.f32 %v4567_v15, %v4535_v45  ;;  %v4550_v1 = vadd.f32 %v4549_v59, %v4519_v57  ;;  %v4526_v49 = vmul.f32 %v6071_v33, %v4462_v28  ;;  %v4542_v55 = vmul.f32 %v6076_v38, %v4462_v28 }
 0x147   :  { %v4527_v2 = vmul.f32 %v6088_v37, %v4463_v6  ;;  %v4543_v30 = vmul.f32 %v6093_v29, %v4463_v6  ;;  %v4537_v44 = vmul.f32 %v6099_v41, %v4449_v5  ;;  %v4521_v36 = vmul.f32 %v6106_v47, %v4449_v5 }
 0x148   :  { %v4558_v32 = vadd.f32 %v4557_v17, %v4526_v49  ;;  %v4576_v23 = vadd.f32 %v4575_v18, %v4542_v55  ;;  %v4569_v9 = vadd.f32 %v4568_v12, %v4536_v52  ;;  %v4551_v53 = vadd.f32 %v4550_v1, %v4520_v40 }
 0x149   :  { %v4528_v17 = vmul.f32 %v6113_v14, %v4464_v62  ;;  %v4544_v18 = vmul.f32 %v6118_v54, %v4464_v62  ;;  %v4529_v59 = vmul.f32 %v6126_v51, %v4465_v26  ;;  %v4545_v15 = vmul.f32 %v6131_v11, %v4465_v26 }
 0x14a   :  { %v4559_v46 = vadd.f32 %v4558_v32, %v4527_v2  ;;  %v4577_v57 = vadd.f32 %v4576_v23, %v4543_v30  ;;  %v4570_v45 = vadd.f32 %v4569_v9, %v4537_v44  ;;  %v4552_v58 = vadd.f32 %v4551_v53, %v4521_v36 }
 0x14c   :  { %v4560_v8 = vadd.f32 %v4559_v46, %v4528_v17  ;;  %v4578_v20 = vadd.f32 %v4577_v57, %v4544_v18  ;;  %4571 = vadd.xlane.f32.xlu0 %v4570_v45  ;;  %4553 = vadd.xlane.f32.xlu1 %v4552_v58 }
 0x14e   :  { %v4561_v28 = vadd.f32 %v4560_v8, %v4529_v59  ;;  %v4579_v13 = vadd.f32 %v4578_v20, %v4545_v15 }
 0x150   :  { %4562 = vadd.xlane.f32.xlu1 %v4561_v28 }
 0x154   :  { %4580 = vadd.xlane.f32.xlu1 %v4579_v13 }
 0x16d   :  { %v2810_v12 = vpop.f32.mrb[8].mxu0  ;;  %v3350_v5 = vpop.f32.mrb[8].mxu1 }
 0x16e   :  { %v4927_v6 = vadd.f32 %v2810_v12, %v5926_v3  ;;  %v4931_v1 = vadd.f32 %v3350_v5, %v5926_v3  ;;  %v2812_v49 = vpop.f32.mrb[9].mxu0  ;;  %v3352_v55 = vpop.f32.mrb[9].mxu1 }
 0x16f   :  { %v4928_v62 = vadd.f32 %v2812_v49, %v5926_v3  ;;  %v4932_v40 = vadd.f32 %v3352_v55, %v5926_v3 }
 0x170   :  { %v4450_v52 = vmax.f32 %v4927_v6, 0.0  ;;  %v4452_v2 = vmax.f32 %v4931_v1, 0.0 }
 0x171   :  { %v4451_v30 = vmax.f32 %v4928_v62, 0.0  ;;  %v2817_v32 = vpop.f32.mrb[10].mxu0  ;;  %v3357_v23 = vpop.f32.mrb[10].mxu1  ;;  %v4453_v9 = vmax.f32 %v4932_v40, 0.0 }
 0x172   :  { %v4616_v26 = vmul.f32 %v5933_v34, %v4450_v52  ;;  %v4632_v44 = vmul.f32 %v5938_v19, %v4450_v52  ;;  %v2819_v36 = vpop.f32.mrb[11].mxu0  ;;  %v3359_v53 = vpop.f32.mrb[11].mxu1  ;;  %v4929_v46 = vadd.f32 %v2817_v32, %v5952_v10  ;;  %v4933_v57 = vadd.f32 %v3357_v23, %v5952_v10 }
 0x173   :  { %v4617_v17 = vmul.f32 %v5945_v27, %v4451_v30  ;;  %v4633_v18 = vmul.f32 %v5950_v39, %v4451_v30  ;;  %v4930_v45 = vadd.f32 %v2819_v36, %v5952_v10  ;;  %v4934_v58 = vadd.f32 %v3359_v53, %v5952_v10 }
 0x174   :  { %v4618_v59 = vmul.f32 %v5959_v50, %v4452_v2  ;;  %v4634_v34 = vmul.f32 %v5964_v31, %v4452_v2  ;;  %v4619_v8 = vmul.f32 %v5971_v42, %v4453_v9  ;;  %v4466_v20 = vmax.f32 %v4929_v46, 0.0 }
 0x175   :  { %v4648_v19 = vadd.f32 %v4617_v17, %v4616_v26  ;;  %v4666_v15 = vadd.f32 %v4633_v18, %v4632_v44  ;;  %v4467_v27 = vmax.f32 %v4930_v45, 0.0  ;;  %v4635_v39 = vmul.f32 %v5976_v60, %v4453_v9 }
 0x176   :  { %v4468_v12 = vmax.f32 %v4933_v57, 0.0  ;;  %v4624_v5 = vmul.f32 %v5987_v63, %v4466_v20  ;;  %v4640_v6 = vmul.f32 %v5992_v4, %v4466_v20  ;;  %v4469_v1 = vmax.f32 %v4934_v58, 0.0 }
 0x177   :  { %v4649_v28 = vadd.f32 %v4648_v19, %v4618_v59  ;;  %v4667_v13 = vadd.f32 %v4666_v15, %v4634_v34  ;;  %v4625_v31 = vmul.f32 %v5998_v61, %v4467_v27  ;;  %v4641_v55 = vmul.f32 %v6003_v7, %v4467_v27 }
 0x178   :  { %v4626_v42 = vmul.f32 %v6011_v24, %v4468_v12  ;;  %v4642_v62 = vmul.f32 %v6016_v48, %v4468_v12  ;;  %v4627_v52 = vmul.f32 %v6023_v56, %v4469_v1  ;;  %v4643_v2 = vmul.f32 %v6028_v16, %v4469_v1 }
 0x179   :  { %v4650_v49 = vadd.f32 %v4649_v28, %v4619_v8  ;;  %v4668_v50 = vadd.f32 %v4667_v13, %v4635_v39  ;;  %v4657_v40 = vadd.f32 %v4625_v31, %v4624_v5  ;;  %v4675_v60 = vadd.f32 %v4641_v55, %v4640_v6 }
 0x17b   :  { %v4658_v63 = vadd.f32 %v4657_v40, %v4626_v42  ;;  %v4676_v30 = vadd.f32 %v4675_v60, %v4642_v62 }
 0x17d   :  { %v4659_v4 = vadd.f32 %v4658_v63, %v4627_v52  ;;  %v4677_v32 = vadd.f32 %v4676_v30, %v4643_v2  ;;  %v4506_v63 = vlaneseq }
 0x19d   :  { %v3890_v23 = vpop.f32.mrb[12].mxu0  ;;  %v4430_v26 = vpop.f32.mrb[12].mxu1 }
 0x19e   :  { %v4935_v61 = vadd.f32 %v3890_v23, %v5926_v3  ;;  %v3892_v44 = vpop.f32.mrb[13].mxu0  ;;  %v4432_v7 = vpop.f32.mrb[13].mxu1  ;;  %v4939_v24 = vadd.f32 %v4430_v26, %v5926_v3 }
 0x19f   :  { %v4936_v48 = vadd.f32 %v3892_v44, %v5926_v3  ;;  %v4940_v9 = vadd.f32 %v4432_v7, %v5926_v3 }
 0x1a0   :  { %v4454_v36 = vmax.f32 %v4935_v61, 0.0  ;;  %v4456_v45 = vmax.f32 %v4939_v24, 0.0 }
 0x1a1   :  { %v4455_v56 = vmax.f32 %v4936_v48, 0.0  ;;  %v3897_v53 = vpop.f32.mrb[14].mxu0  ;;  %v4437_v16 = vpop.f32.mrb[14].mxu1  ;;  %v4457_v34 = vmax.f32 %v4940_v9, 0.0 }
 0x1a2   :  { %v4620_v17 = vmul.f32 %v6038_v43, %v4454_v36  ;;  %v4636_v18 = vmul.f32 %v6043_v35, %v4454_v36  ;;  %v3899_v46 = vpop.f32.mrb[15].mxu0  ;;  %v4439_v57 = vpop.f32.mrb[15].mxu1  ;;  %v4937_v3 = vadd.f32 %v3897_v53, %v5952_v10  ;;  %v4941_v8 = vadd.f32 %v4437_v16, %v5952_v10 }
 0x1a3   :  { %v4621_v58 = vmul.f32 %v6050_v22, %v4455_v56  ;;  %v4637_v59 = vmul.f32 %v6055_v0, %v4455_v56  ;;  %v4938_v20 = vadd.f32 %v3899_v46, %v5952_v10  ;;  %v4942_v43 = vadd.f32 %v4439_v57, %v5952_v10 }
 0x1a4   :  { %v4651_v19 = vadd.f32 %v4650_v49, %v4620_v17  ;;  %v4669_v15 = vadd.f32 %v4668_v50, %v4636_v18  ;;  %v4470_v39 = vmax.f32 %v4937_v3, 0.0  ;;  %v4622_v28 = vmul.f32 %v6066_v21, %v4456_v45  ;;  %v4508_v3 = vld [vmem:[%s6204_s4] sm:$0x3] }
 0x1a5   :  { %v4472_v13 = vmax.f32 %v4941_v8, 0.0  ;;  %v4471_v22 = vmax.f32 %v4938_v20, 0.0  ;;  %v4638_v0 = vmul.f32 %v6083_v25, %v4456_v45  ;;  %v4623_v12 = vmul.f32 %v6106_v47, %v4457_v34 }
 0x1a6   :  { %v4652_v27 = vadd.f32 %v4651_v19, %v4621_v58  ;;  %v4670_v35 = vadd.f32 %v4669_v15, %v4637_v59  ;;  %v4628_v5 = vmul.f32 %v6071_v33, %v4470_v39  ;;  %v4644_v6 = vmul.f32 %v6076_v38, %v4470_v39 }
 0x1a7   :  { %v4639_v1 = vmul.f32 %v6099_v41, %v4457_v34  ;;  %v4629_v49 = vmul.f32 %v6088_v37, %v4471_v22  ;;  %v4645_v10 = vmul.f32 %v6093_v29, %v4471_v22  ;;  %v4473_v50 = vmax.f32 %v4942_v43, 0.0 }
 0x1a8   :  { %v4660_v31 = vadd.f32 %v4659_v4, %v4628_v5  ;;  %v4678_v55 = vadd.f32 %v4677_v32, %v4644_v6  ;;  %v4653_v21 = vadd.f32 %v4652_v27, %v4622_v28  ;;  %v4671_v42 = vadd.f32 %v4670_v35, %v4638_v0 }
 0x1a9   :  { %v4630_v62 = vmul.f32 %v6113_v14, %v4472_v13  ;;  %v4646_v25 = vmul.f32 %v6118_v54, %v4472_v13  ;;  %v4631_v38 = vmul.f32 %v6126_v51, %v4473_v50  ;;  %v4647_v41 = vmul.f32 %v6131_v11, %v4473_v50 }
 0x1aa   :  { %v4661_v47 = vadd.f32 %v4660_v31, %v4629_v49  ;;  %v4679_v40 = vadd.f32 %v4678_v55, %v4645_v10  ;;  %v4654_v33 = vadd.f32 %v4653_v21, %v4623_v12  ;;  %v4672_v60 = vadd.f32 %v4671_v42, %v4639_v1 }
 0x1ab   :  { %v4507_v14 = vand.u32 127, %v4506_v63  ;;  %v4587_v4 = vshrl.u32 %v4506_v63, 7 }
 0x1ac   :  { %4655 = vadd.xlane.f32.xlu1 %v4654_v33  ;;  %v4662_v37 = vadd.f32 %v4661_v47, %v4630_v62  ;;  %v4680_v29 = vadd.f32 %v4679_v40, %v4646_v25 }
 0x1ad   :  { %v4590_v30 = vadd.s32 4294967288, %v4507_v14  ;;  %v4588_v26 = vsub.s32 %v4507_v14, %v4587_v4  ;;  %vm4613_vm5 = vcmp.eq.s32.totalorder %v4507_v14, 0  ;;  %vm4711_vm6 = vcmp.eq.s32.totalorder %v4507_v14, 1 }
 0x1ae   :  { %v4663_v52 = vadd.f32 %v4662_v37, %v4631_v38  ;;  %v4681_v2 = vadd.f32 %v4680_v29, %v4647_v41 }
 0x1af   :  { %v4593_v32 = vsub.s32 %v4590_v30, %v4587_v4 }
 0x1b0   :  { %4673 = vadd.xlane.f32.xlu1 %v4672_v60 }
 0x1b4   :  { %4664 = vadd.xlane.f32.xlu1 %v4663_v52 }
 0x1b8   :  { %4682 = vadd.xlane.f32.xlu1 %v4681_v2 }
 0x1d9   :  { %v4554_v54 = vpop.xlane.xlu1 %4553  ;;  %v4572_v61 = vpop.xlane.xlu0 %4571 }
 0x1da   :  { %v4600_v11 = vrot.slane %v4572_v61, %v4588_v26  ;;  %v4589_v7 = vrot.slane %v4554_v54, %v4588_v26 }
 0x1dd   :  { %v4563_v23 = vpop.xlane.xlu1 %4562 }
 0x1de   :  { %v4594_v51 = vrot.slane %v4563_v23, %v4593_v32 }
 0x1e0   :  { %v4596_v48 = vsel %vm4595_vm2, %v4594_v51, %v4589_v7 }
 0x1e1   :  { %v4581_v44 = vpop.xlane.xlu1 %4580 }
 0x1e2   :  { %v4604_v24 = vrot.slane %v4581_v44, %v4593_v32 }
 0x1e4   :  { %v4605_v9 = vsel %vm4595_vm2, %v4604_v24, %v4600_v11 }
 0x1e5   :  { %v4607_v36 = vsel %vm4606_vm3, %v4605_v9, %v4596_v48 }
 0x1e6   :  { %v4610_v56 = vsel %vm4609_vm4, %v4607_v36, 0.0 }
 0x1e7   :  { %4611 = vadd.xlane.f32.xlu1 %v4610_v56 }
 0x239   :  { %v4656_v53 = vpop.xlane.xlu1 %4655 }
 0x23a   :  { %v4691_v57 = vrot.slane %v4656_v53, %v4588_v26 }
 0x23d   :  { %v4674_v16 = vpop.xlane.xlu1 %4673 }
 0x23e   :  { %v4700_v45 = vrot.slane %v4674_v16, %v4588_v26 }
 0x241   :  { %v4665_v17 = vpop.xlane.xlu1 %4664 }
 0x242   :  { %v4695_v18 = vrot.slane %v4665_v17, %v4593_v32 }
 0x244   :  { %v4696_v59 = vsel %vm4595_vm2, %v4695_v18, %v4691_v57 }
 0x245   :  { %v4683_v46 = vpop.xlane.xlu1 %4682 }
 0x246   :  { %v4704_v58 = vrot.slane %v4683_v46, %v4593_v32 }
 0x248   :  { %v4705_v34 = vsel %vm4595_vm2, %v4704_v58, %v4700_v45 }
 0x249   :  { %v4706_v19 = vsel %vm4606_vm3, %v4705_v34, %v4696_v59 }
 0x24a   :  { %v4708_v15 = vsel %vm4609_vm4, %v4706_v19, 0.0 }
 0x24b   :  { %4709 = vadd.xlane.f32.xlu1 %v4708_v15 }
 0x25c   :  { %4511 = vperm.xlu1 %5106, %v4508_v3  }
 0x274   :  { %v4612_v8 = vpop.xlane.xlu1 %4611 }
 0x275   :  { %v4614_v43 = vsel %vm4613_vm5, %v4612_v8, 0.0 }
 0x2d8   :  { %v4710_v20 = vpop.xlane.xlu1 %4709 }
 0x2d9   :  { %v4712_v39 = vsel %vm4711_vm6, %v4710_v20, 0.0 }
 0x2dc   :  { %v4512_v27 = vpop.permute.xlu1 %4511 }
 0x2dd   :  { %v4615_v35 = vadd.f32 %v4614_v43, %v4512_v27 }
 0x2df   :  { %v4713_v28 = vadd.f32 %v4712_v39, %v4615_v35 }
 0x2e1   :  { %4714 = vst [vmem:[%s6205_s5] sm:$0x3] %v4713_v28 }

</bundles_post_ra>
